<compile_context>
chip_gen: v6e
topology: v6e:2x2x1
jax: 0.10.0
libtpu: 0.0.40
codegen_flags: <defaults>
</compile_context>

<pallas_src>
import math
import functools

import jax
import jax.numpy as jnp
from jax import lax
from jax.experimental import pallas as pl
from jax.experimental.pallas import tpu as pltpu

_LANE = 128
_SUBLANE = 8


def _round_up(x, m):
    return (x + m - 1) // m * m


def _gelu_tanh(x):
    c = math.sqrt(2.0 / math.pi)
    return 0.5 * x * (1.0 + jnp.tanh(c * (x + 0.044715 * x * x * x)))


# ---------------------------------------------------------------------------
# Fused encoder kernel: for each batch element, run the whole block stack with
# the activation resident in VMEM, then the final LayerNorm + projection conv.
# ---------------------------------------------------------------------------
def _encoder_kernel(len_ref, x_ref,
                    gamma_ref, beta_ref, w0_ref, b0_ref, w1_ref, b1_ref,
                    gammaf_ref, betaf_ref, wp_ref, bp_ref,
                    mel_ref,
                    act_ref, ybuf_ref,
                    *, stack, kernel_size, proj_kernel_size, dilation,
                    pad, pad_p, p_off, t_pad, t_real, c_real,
                    eps, rescaler, compute_dtype):
    b = pl.program_id(0)
    length = len_ref[b]
    c_pad = act_ref.shape[1]

    row_ids = lax.broadcasted_iota(jnp.int32, (t_pad, 1), 0)
    fmask = (row_ids < length).astype(jnp.float32)      # in-length rows (block masking)
    tmask = (row_ids < t_real).astype(jnp.float32)      # real (un-padded) rows
    ch_mask = (lax.broadcasted_iota(jnp.int32, (1, c_pad), 1) < c_real
               ).astype(jnp.float32)
    inv_c = 1.0 / float(c_real)

    # Load the activation once; it stays f32 in VMEM for the whole stack.
    act_ref[...] = x_ref[0].astype(jnp.float32)
    # Zero the extended conv buffer (its border rows implement conv zero-padding).
    ybuf_ref[...] = jnp.zeros_like(ybuf_ref)

    def layer_norm(x, gamma, beta):
        xm = x * ch_mask
        mean = jnp.sum(xm, axis=-1, keepdims=True) * inv_c
        xc = xm - mean
        xcm = xc * ch_mask
        var = jnp.sum(xcm * xcm, axis=-1, keepdims=True) * inv_c
        # gamma/beta are zero on padded lanes, so padded lanes of the result are 0.
        return xc * lax.rsqrt(var + eps) * gamma + beta

    def conv_taps(w_ref, w_base, n_taps, start0, step):
        # Accumulate K shifted-window dots in f32 (MXU accumulation sums the taps).
        acc = None
        for k in range(n_taps):
            tap = ybuf_ref[pl.ds(start0 + k * step, t_pad), :].astype(compute_dtype)
            d = jnp.dot(tap, w_ref[w_base + k], preferred_element_type=jnp.float32)
            acc = d if acc is None else acc + d
        return acc

    # ---------------- residual block stack (unrolled; stack is small) ----------------
    for s in range(stack):
        x = act_ref[...]
        y = layer_norm(x, gamma_ref[s], beta_ref[s]) * fmask
        ybuf_ref[pl.ds(p_off, t_pad), :] = y          # aligned store into zero border
        h = conv_taps(w0_ref, s * kernel_size, kernel_size, p_off - pad, dilation)
        # gelu(0)=0 and conv_1 is 1x1 -> intermediate masks are redundant; the single
        # final mask below reproduces PyTorch exactly at every valid position.
        h = _gelu_tanh((h + b0_ref[s]) * rescaler)
        z = jnp.dot(h.astype(compute_dtype), w1_ref[s],
                    preferred_element_type=jnp.float32)
        act_ref[...] = (z + b1_ref[s] + x) * fmask

    # ---------------- final LayerNorm + projection conv (no length mask) -------------
    xf = act_ref[...]
    yf = layer_norm(xf, gammaf_ref[...], betaf_ref[...]) * tmask
    ybuf_ref[pl.ds(p_off, t_pad), :] = yf
    mel = conv_taps(wp_ref, 0, proj_kernel_size, p_off - pad_p, 1)
    mel_ref[0] = (mel + bp_ref[...]).astype(mel_ref.dtype)


# ---------------------------------------------------------------------------
# Wrapper
# ---------------------------------------------------------------------------
def _compiler_params(vmem_req):
    cap = 128 << 20
    try:
        info = pltpu.get_tpu_info()
        cap = int(getattr(info, "vmem_capacity_bytes", cap))
    except Exception:
        pass
    ceiling = max(cap - (12 << 20), 16 << 20)            # generation-aware (v7x: 64 MiB)
    limit = int(min(max(vmem_req + (8 << 20), 32 << 20), ceiling))
    return pltpu.CompilerParams(dimension_semantics=("parallel",),
                                vmem_limit_bytes=limit)


def prior_encoder(encodings, lengths, params, *, kernel_size, proj_kernel_size,
                  dilation=1, eps=1e-5, compute_dtype=jnp.bfloat16):
    """encodings: [B, C, T] (PyTorch NCT).  lengths: [B].  Returns [B, N_Mel, T]."""
    blocks, (gamma_f, beta_f), (wp, bp) = params
    B, C, T = encodings.shape
    n_mel = wp.shape[0]
    stack = len(blocks)
    assert stack >= 1
    assert kernel_size % 2 == 1, "only odd kernel_size matches PyTorch 'same' padding"
    assert proj_kernel_size % 2 == 1, "only odd projection kernel_size supported"
    # TODO(synk): for very long sequences where [T_pad, C_pad] activations no longer fit
    # VMEM, add a time-chunked variant (halo recomputation across chunks).

    c_pad = _round_up(C, _LANE)
    h_pad = _round_up(2 * C, _LANE)
    m_pad = _round_up(n_mel, _LANE)
    t_pad = _round_up(T, _SUBLANE)

    pad = dilation * (kernel_size - 1) // 2
    pad_p = (proj_kernel_size - 1) // 2
    p_off = _round_up(max(pad, pad_p, 1), _SUBLANE)       # aligned center placement
    t_ext = t_pad + 2 * p_off

    f32 = jnp.float32
    # One-time layout change NCT -> NTC, pad T to 8 and C to 128 with zeros.
    x = jnp.transpose(encodings, (0, 2, 1)).astype(f32)
    x = jnp.pad(x, ((0, 0), (0, t_pad - T), (0, c_pad - C)))
    lengths = lengths.astype(jnp.int32)

    def pad_vec(v, n):
        return jnp.pad(v.astype(f32), (0, n - v.shape[0])).reshape(1, n)

    gammas, betas, w0s, b0s, w1s, b1s = [], [], [], [], [], []
    for (gamma, beta, w0, b0, w1, b1) in blocks:
        gammas.append(pad_vec(gamma, c_pad))
        betas.append(pad_vec(beta, c_pad))
        w0_t = jnp.transpose(w0.astype(f32), (2, 1, 0))                  # [K, C, 2C]
        w0s.append(jnp.pad(w0_t, ((0, 0), (0, c_pad - C), (0, h_pad - 2 * C))))
        b0s.append(pad_vec(b0, h_pad))
        w1_t = jnp.transpose(w1[:, :, 0].astype(f32), (1, 0))            # [2C, C]
        w1s.append(jnp.pad(w1_t, ((0, h_pad - 2 * C), (0, c_pad - C))))
        b1s.append(pad_vec(b1, c_pad))

    gamma_stack = jnp.stack(gammas)                                      # [S, 1, Cp]
    beta_stack = jnp.stack(betas)
    w0_stack = jnp.concatenate(w0s, axis=0).astype(compute_dtype)        # [S*K, Cp, Hp]
    b0_stack = jnp.stack(b0s)                                            # [S, 1, Hp]
    w1_stack = jnp.stack(w1s).astype(compute_dtype)                      # [S, Hp, Cp]
    b1_stack = jnp.stack(b1s)                                            # [S, 1, Cp]

    wp_t = jnp.transpose(wp.astype(f32), (2, 1, 0))                      # [Kp, C, M]
    wp_mat = jnp.pad(wp_t, ((0, 0), (0, c_pad - C),
                            (0, m_pad - n_mel))).astype(compute_dtype)   # [Kp, Cp, Mp]
    gamma_fp, beta_fp = pad_vec(gamma_f, c_pad), pad_vec(beta_f, c_pad)
    bp_p = pad_vec(bp, m_pad)

    kern = functools.partial(
        _encoder_kernel, stack=stack, kernel_size=kernel_size,
        proj_kernel_size=proj_kernel_size, dilation=dilation,
        pad=pad, pad_p=pad_p, p_off=p_off, t_pad=t_pad, t_real=T,
        c_real=C, eps=eps, rescaler=kernel_size ** (-0.5),
        compute_dtype=compute_dtype)

    csz = jnp.dtype(compute_dtype).itemsize
    w_bytes = (w0_stack.size + w1_stack.size + wp_mat.size) * csz
    vec_bytes = (gamma_stack.size + beta_stack.size + b0_stack.size + b1_stack.size
                 + 2 * c_pad + m_pad) * 4
    scratch_bytes = (t_pad * c_pad + t_ext * c_pad) * 4
    io_bytes = 2 * t_pad * c_pad * 4 + 2 * t_pad * m_pad * 4             # double-buffered
    tmp_bytes = t_pad * (3 * c_pad + 2 * h_pad + m_pad) * 4
    # TODO(synk): pipeline_mode=pl.Buffered(1) on the constant-index weight specs would
    # halve their VMEM on v7x; left at default buffering for portability.
    vmem_req = 2 * (w_bytes + vec_bytes) + scratch_bytes + io_bytes + tmp_bytes

    flops = 2 * B * t_pad * (stack * (kernel_size * c_pad * h_pad + h_pad * c_pad)
                             + proj_kernel_size * c_pad * m_pad)
    cost = pl.CostEstimate(
        flops=int(flops),
        transcendentals=int(B * t_pad * stack * h_pad),
        bytes_accessed=int(x.size * 4 + B * t_pad * m_pad * 4 + w_bytes + vec_bytes))

    grid_spec = pltpu.PrefetchScalarGridSpec(
        num_scalar_prefetch=1,
        grid=(B,),
        in_specs=[
            pl.BlockSpec((1, t_pad, c_pad), lambda b, lens: (b, 0, 0)),
            pl.BlockSpec(gamma_stack.shape, lambda b, lens: (0, 0, 0)),
            pl.BlockSpec(beta_stack.shape, lambda b, lens: (0, 0, 0)),
            pl.BlockSpec(w0_stack.shape, lambda b, lens: (0, 0, 0)),
            pl.BlockSpec(b0_stack.shape, lambda b, lens: (0, 0, 0)),
            pl.BlockSpec(w1_stack.shape, lambda b, lens: (0, 0, 0)),
            pl.BlockSpec(b1_stack.shape, lambda b, lens: (0, 0, 0)),
            pl.BlockSpec(gamma_fp.shape, lambda b, lens: (0, 0)),
            pl.BlockSpec(beta_fp.shape, lambda b, lens: (0, 0)),
            pl.BlockSpec(wp_mat.shape, lambda b, lens: (0, 0, 0)),
            pl.BlockSpec(bp_p.shape, lambda b, lens: (0, 0)),
        ],
        out_specs=pl.BlockSpec((1, t_pad, m_pad), lambda b, lens: (b, 0, 0)),
        scratch_shapes=[pltpu.VMEM((t_pad, c_pad), jnp.float32),
                        pltpu.VMEM((t_ext, c_pad), jnp.float32)],
    )

    mel = pl.pallas_call(
        kern,
        out_shape=jax.ShapeDtypeStruct((B, t_pad, m_pad), jnp.float32),
        grid_spec=grid_spec,
        compiler_params=_compiler_params(vmem_req),
        cost_estimate=cost,
    )(lengths, x, gamma_stack, beta_stack, w0_stack, b0_stack, w1_stack, b1_stack,
      gamma_fp, beta_fp, wp_mat, bp_p)

    # One-time layout change back: [B, T, M] -> [B, M, T].
    return jnp.transpose(mel[:, :T, :n_mel], (0, 2, 1))


# ---------------------------------------------------------------------------
# Pure-JAX reference replicating the PyTorch forward (for validation)
# ---------------------------------------------------------------------------
def _reference_encoder(x_bct, lengths, params, *, kernel_size, proj_kernel_size,
                       dilation=1, eps=1e-5):
    blocks, (gamma_f, beta_f), (wp, bp) = params
    B, C, T = x_bct.shape
    prec = lax.Precision.HIGHEST
    fmask = (jnp.arange(T)[None, :] < lengths[:, None]).astype(jnp.float32)[:, None, :]

    def layer_norm(x_nct, gamma, beta):
        xt = jnp.transpose(x_nct, (0, 2, 1))
        mean = xt.mean(-1, keepdims=True)
        var = ((xt - mean) ** 2).mean(-1, keepdims=True)
        y = (xt - mean) * lax.rsqrt(var + eps) * gamma + beta
        return jnp.transpose(y, (0, 2, 1))

    x = x_bct
    pad = dilation * (kernel_size - 1) // 2
    for (gamma, beta, w0, b0, w1, b1) in blocks:
        residual = x
        y = layer_norm(x, gamma, beta) * fmask
        h = lax.conv_general_dilated(y, w0, (1,), [(pad, pad)],
                                     rhs_dilation=(dilation,),
                                     dimension_numbers=('NCH', 'OIH', 'NCH'),
                                     precision=prec)
        h = (h + b0[None, :, None]) * fmask
        h = _gelu_tanh(h * kernel_size ** (-0.5)) * fmask
        z = lax.conv_general_dilated(h, w1, (1,), [(0, 0)],
                                     dimension_numbers=('NCH', 'OIH', 'NCH'),
                                     precision=prec)
        z = (z + b1[None, :, None]) * fmask
        x = (z + residual) * fmask

    y = layer_norm(x, gamma_f, beta_f)
    padp = (proj_kernel_size - 1) // 2
    mel = lax.conv_general_dilated(y, wp, (1,), [(padp, padp)],
                                   dimension_numbers=('NCH', 'OIH', 'NCH'),
                                   precision=prec)
    return mel + bp[None, :, None]


if __name__ == "__main__":
    # Small hyper-parameters: Encoder.Size=8, Kernel_Size=3, Stack=2, N_Mel=4,
    # Projection_Kernel_Size=3; B=2, T=16 with one short sequence (length 11) so
    # length masking and conv boundary handling are both exercised.
    B, C, T = 2, 8, 16
    n_mel, kernel_size, proj_kernel_size, stack = 4, 3, 3, 2

    key = jax.random.PRNGKey(0)
    keys = jax.random.split(key, 1 + 6 * stack + 4)
    it = iter(keys)

    x = jax.random.normal(next(it), (B, C, T), dtype=jnp.float32)
    lengths = jnp.array([T, 11], dtype=jnp.int32)

    blocks = []
    for _ in range(stack):
        gamma = 1.0 + 0.1 * jax.random.normal(next(it), (C,), jnp.float32)
        beta = 0.1 * jax.random.normal(next(it), (C,), jnp.float32)
        w0 = 0.2 * jax.random.normal(next(it), (2 * C, C, kernel_size), jnp.float32)
        b0 = 0.1 * jax.random.normal(next(it), (2 * C,), jnp.float32)
        w1 = 0.2 * jax.random.normal(next(it), (C, 2 * C, 1), jnp.float32)
        b1 = 0.1 * jax.random.normal(next(it), (C,), jnp.float32)
        blocks.append((gamma, beta, w0, b0, w1, b1))
    gamma_f = 1.0 + 0.1 * jax.random.normal(next(it), (C,), jnp.float32)
    beta_f = 0.1 * jax.random.normal(next(it), (C,), jnp.float32)
    wp = 0.2 * jax.random.normal(next(it), (n_mel, C, proj_kernel_size), jnp.float32)
    bp = 0.1 * jax.random.normal(next(it), (n_mel,), jnp.float32)
    params = (blocks, (gamma_f, beta_f), (wp, bp))

    ref = _reference_encoder(x, lengths, params, kernel_size=kernel_size,
                             proj_kernel_size=proj_kernel_size)

    # f32 compute path (all MXU operands f32).
    out_f32 = prior_encoder(x, lengths, params, kernel_size=kernel_size,
                            proj_kernel_size=proj_kernel_size,
                            compute_dtype=jnp.float32)
    out_f32 = jax.block_until_ready(out_f32)
    assert out_f32.shape == (B, n_mel, T)
    err = float(jnp.max(jnp.abs(out_f32 - ref)))
    assert err < 3e-2, f"f32 kernel mismatch vs reference: {err}"

    # Performance path: bf16 MXU operands, f32 VMEM-resident activations/accumulation.
    out_bf16 = prior_encoder(x, lengths, params, kernel_size=kernel_size,
                             proj_kernel_size=proj_kernel_size,
                             compute_dtype=jnp.bfloat16)
    out_bf16 = jax.block_until_ready(out_bf16)
    err_bf16 = float(jnp.max(jnp.abs(out_bf16 - ref)))
    assert err_bf16 < 2e-1, f"bf16 kernel mismatch vs reference: {err_bf16}"

    print("KERNEL_OK")
</pallas_src>

<mosaic_0001>
module attributes {stable_mosaic.version = 11 : i64} {
  func.func @_encoder_kernel(%arg0: i32, %arg1: memref<2xi32, #tpu.memory_space<smem>>, %arg2: memref<1x16x128xf32, #tpu.memory_space<vmem>>, %arg3: memref<2x1x128xf32, #tpu.memory_space<vmem>>, %arg4: memref<2x1x128xf32, #tpu.memory_space<vmem>>, %arg5: memref<6x128x128xf32, #tpu.memory_space<vmem>>, %arg6: memref<2x1x128xf32, #tpu.memory_space<vmem>>, %arg7: memref<2x128x128xf32, #tpu.memory_space<vmem>>, %arg8: memref<2x1x128xf32, #tpu.memory_space<vmem>>, %arg9: memref<1x128xf32, #tpu.memory_space<vmem>>, %arg10: memref<1x128xf32, #tpu.memory_space<vmem>>, %arg11: memref<3x128x128xf32, #tpu.memory_space<vmem>>, %arg12: memref<1x128xf32, #tpu.memory_space<vmem>>, %arg13: memref<1x16x128xf32, #tpu.memory_space<vmem>>, %arg14: memref<16x128xf32, #tpu.memory_space<vmem>>, %arg15: memref<32x128xf32, #tpu.memory_space<vmem>>) attributes {dimension_semantics = [#tpu.dimension_semantics<parallel>], iteration_bounds = array<i64: 2>, scalar_prefetch = 1 : i64, scratch_operands = 2 : i64, tpu.core_type = #tpu.core_type<tc>, window_params = [{transform_indices = @transform_0, window_bounds = array<i64: 1, 16, 128>}, {pipeline_mode = #tpu.pipeline_mode<synchronous>, transform_indices = @transform_1, window_bounds = array<i64: 2, 1, 128>}, {pipeline_mode = #tpu.pipeline_mode<synchronous>, transform_indices = @transform_2, window_bounds = array<i64: 2, 1, 128>}, {pipeline_mode = #tpu.pipeline_mode<synchronous>, transform_indices = @transform_3, window_bounds = array<i64: 6, 128, 128>}, {pipeline_mode = #tpu.pipeline_mode<synchronous>, transform_indices = @transform_4, window_bounds = array<i64: 2, 1, 128>}, {pipeline_mode = #tpu.pipeline_mode<synchronous>, transform_indices = @transform_5, window_bounds = array<i64: 2, 128, 128>}, {pipeline_mode = #tpu.pipeline_mode<synchronous>, transform_indices = @transform_6, window_bounds = array<i64: 2, 1, 128>}, {pipeline_mode = #tpu.pipeline_mode<synchronous>, transform_indices = @transform_7, window_bounds = array<i64: 1, 128>}, {pipeline_mode = #tpu.pipeline_mode<synchronous>, transform_indices = @transform_8, window_bounds = array<i64: 1, 128>}, {pipeline_mode = #tpu.pipeline_mode<synchronous>, transform_indices = @transform_9, window_bounds = array<i64: 3, 128, 128>}, {pipeline_mode = #tpu.pipeline_mode<synchronous>, transform_indices = @transform_10, window_bounds = array<i64: 1, 128>}, {transform_indices = @transform_11, window_bounds = array<i64: 1, 16, 128>}]} {
    %0 = arith.index_cast %arg0 : i32 to index
    %1 = memref.load %arg1[%0] : memref<2xi32, #tpu.memory_space<smem>>
    %2 = tpu.iota {dimensions = array<i32: 0>} : vector<16x1xi32>
    %3 = vector.broadcast %1 : i32 to vector<16x1xi32>
    %4 = arith.cmpi slt, %2, %3 : vector<16x1xi32>
    %5 = arith.extui %4 : vector<16x1xi1> to vector<16x1xi32>
    %6 = arith.sitofp %5 : vector<16x1xi32> to vector<16x1xf32>
    %c16_i32 = arith.constant 16 : i32
    %7 = vector.broadcast %c16_i32 : i32 to vector<16x1xi32>
    %8 = arith.cmpi slt, %2, %7 : vector<16x1xi32>
    %9 = arith.extui %8 : vector<16x1xi1> to vector<16x1xi32>
    %10 = arith.sitofp %9 : vector<16x1xi32> to vector<16x1xf32>
    %11 = tpu.iota {dimensions = array<i32: 1>} : vector<1x128xi32>
    %c8_i32 = arith.constant 8 : i32
    %12 = vector.broadcast %c8_i32 : i32 to vector<1x128xi32>
    %13 = arith.cmpi slt, %11, %12 : vector<1x128xi32>
    %14 = arith.extui %13 : vector<1x128xi1> to vector<1x128xi32>
    %15 = arith.sitofp %14 : vector<1x128xi32> to vector<1x128xf32>
    %c0 = arith.constant 0 : index
    %c0_0 = arith.constant 0 : index
    %c0_1 = arith.constant 0 : index
    %16 = vector.load %arg2[%c0, %c0_0, %c0_1] : memref<1x16x128xf32, #tpu.memory_space<vmem>>, vector<1x16x128xf32>
    %17 = vector.shape_cast %16 : vector<1x16x128xf32> to vector<16x128xf32>
    %c0_2 = arith.constant 0 : index
    %c0_3 = arith.constant 0 : index
    %18 = vector.load %arg14[%c0_2, %c0_3] : memref<16x128xf32, #tpu.memory_space<vmem>>, vector<16x128xf32>
    tpu.vector_store %arg14[%c0_2, %c0_3], %17 {strides = array<i32>} : memref<16x128xf32, #tpu.memory_space<vmem>>, vector<16x128xf32>,
    %cst = arith.constant 0.000000e+00 : f32
    %19 = vector.broadcast %cst : f32 to vector<32x128xf32>
    %c0_4 = arith.constant 0 : index
    %c0_5 = arith.constant 0 : index
    %20 = vector.load %arg15[%c0_4, %c0_5] : memref<32x128xf32, #tpu.memory_space<vmem>>, vector<32x128xf32>
    tpu.vector_store %arg15[%c0_4, %c0_5], %19 {strides = array<i32>} : memref<32x128xf32, #tpu.memory_space<vmem>>, vector<32x128xf32>,
    %c0_6 = arith.constant 0 : index
    %c0_7 = arith.constant 0 : index
    %21 = vector.load %arg14[%c0_6, %c0_7] : memref<16x128xf32, #tpu.memory_space<vmem>>, vector<16x128xf32>
    %c0_8 = arith.constant 0 : index
    %c0_9 = arith.constant 0 : index
    %c0_10 = arith.constant 0 : index
    %22 = vector.load %arg3[%c0_8, %c0_9, %c0_10] : memref<2x1x128xf32, #tpu.memory_space<vmem>>, vector<1x1x128xf32>
    %23 = vector.shape_cast %22 : vector<1x1x128xf32> to vector<1x128xf32>
    %c0_11 = arith.constant 0 : index
    %c0_12 = arith.constant 0 : index
    %c0_13 = arith.constant 0 : index
    %24 = vector.load %arg4[%c0_11, %c0_12, %c0_13] : memref<2x1x128xf32, #tpu.memory_space<vmem>>, vector<1x1x128xf32>
    %25 = vector.shape_cast %24 : vector<1x1x128xf32> to vector<1x128xf32>
    %26 = vector.broadcast %15 : vector<1x128xf32> to vector<16x128xf32>
    %27 = arith.mulf %21, %26 : vector<16x128xf32>
    %cst_14 = arith.constant dense<0.000000e+00> : vector<16xf32>
    %28 = vector.multi_reduction <add>, %27, %cst_14 [1] : vector<16x128xf32> to vector<16xf32>
    %29 = vector.shape_cast %28 : vector<16xf32> to vector<16x1xf32>
    %cst_15 = arith.constant 1.250000e-01 : f32
    %30 = vector.broadcast %cst_15 : f32 to vector<16x1xf32>
    %31 = arith.mulf %29, %30 : vector<16x1xf32>
    %32 = vector.broadcast %31 : vector<16x1xf32> to vector<16x128xf32>
    %33 = arith.subf %27, %32 : vector<16x128xf32>
    %34 = vector.broadcast %15 : vector<1x128xf32> to vector<16x128xf32>
    %35 = arith.mulf %33, %34 : vector<16x128xf32>
    %36 = arith.mulf %35, %35 : vector<16x128xf32>
    %cst_16 = arith.constant dense<0.000000e+00> : vector<16xf32>
    %37 = vector.multi_reduction <add>, %36, %cst_16 [1] : vector<16x128xf32> to vector<16xf32>
    %38 = vector.shape_cast %37 : vector<16xf32> to vector<16x1xf32>
    %cst_17 = arith.constant 1.250000e-01 : f32
    %39 = vector.broadcast %cst_17 : f32 to vector<16x1xf32>
    %40 = arith.mulf %38, %39 : vector<16x1xf32>
    %cst_18 = arith.constant 9.99999974E-6 : f32
    %41 = vector.broadcast %cst_18 : f32 to vector<16x1xf32>
    %42 = arith.addf %40, %41 : vector<16x1xf32>
    %43 = math.rsqrt %42 : vector<16x1xf32>
    %44 = vector.broadcast %43 : vector<16x1xf32> to vector<16x128xf32>
    %45 = arith.mulf %33, %44 : vector<16x128xf32>
    %46 = vector.broadcast %23 : vector<1x128xf32> to vector<16x128xf32>
    %47 = arith.mulf %45, %46 : vector<16x128xf32>
    %48 = vector.broadcast %25 : vector<1x128xf32> to vector<16x128xf32>
    %49 = arith.addf %47, %48 : vector<16x128xf32>
    %50 = vector.broadcast %6 : vector<16x1xf32> to vector<16x128xf32>
    %51 = arith.mulf %49, %50 : vector<16x128xf32>
    %c8 = arith.constant 8 : index
    %c0_19 = arith.constant 0 : index
    %52 = vector.load %arg15[%c8, %c0_19] : memref<32x128xf32, #tpu.memory_space<vmem>>, vector<16x128xf32>
    tpu.vector_store %arg15[%c8, %c0_19], %51 {strides = array<i32>} : memref<32x128xf32, #tpu.memory_space<vmem>>, vector<16x128xf32>,
    %c7 = arith.constant 7 : index
    %c0_20 = arith.constant 0 : index
    %53 = vector.load %arg15[%c7, %c0_20] : memref<32x128xf32, #tpu.memory_space<vmem>>, vector<16x128xf32>
    %c0_21 = arith.constant 0 : index
    %c0_22 = arith.constant 0 : index
    %c0_23 = arith.constant 0 : index
    %54 = vector.load %arg5[%c0_21, %c0_22, %c0_23] : memref<6x128x128xf32, #tpu.memory_space<vmem>>, vector<1x128x128xf32>
    %55 = vector.shape_cast %54 : vector<1x128x128xf32> to vector<128x128xf32>
    %cst_24 = arith.constant dense<0.000000e+00> : vector<16x128xf32>
    %56 = tpu.matmul %53, %55, %cst_24 {dimension_numbers = #tpu.dot_dimension_numbers<[1], [0], [0], [1], [0, 0, 1, 1], [], []>} : vector<16x128xf32>, vector<128x128xf32>, vector<16x128xf32> -> vector<16x128xf32>
    %c8_25 = arith.constant 8 : index
    %c0_26 = arith.constant 0 : index
    %57 = vector.load %arg15[%c8_25, %c0_26] : memref<32x128xf32, #tpu.memory_space<vmem>>, vector<16x128xf32>
    %c1 = arith.constant 1 : index
    %c0_27 = arith.constant 0 : index
    %c0_28 = arith.constant 0 : index
    %58 = vector.load %arg5[%c1, %c0_27, %c0_28] : memref<6x128x128xf32, #tpu.memory_space<vmem>>, vector<1x128x128xf32>
    %59 = vector.shape_cast %58 : vector<1x128x128xf32> to vector<128x128xf32>
    %cst_29 = arith.constant dense<0.000000e+00> : vector<16x128xf32>
    %60 = tpu.matmul %57, %59, %cst_29 {dimension_numbers = #tpu.dot_dimension_numbers<[1], [0], [0], [1], [0, 0, 1, 1], [], []>} : vector<16x128xf32>, vector<128x128xf32>, vector<16x128xf32> -> vector<16x128xf32>
    %61 = arith.addf %56, %60 : vector<16x128xf32>
    %c9 = arith.constant 9 : index
    %c0_30 = arith.constant 0 : index
    %62 = vector.load %arg15[%c9, %c0_30] : memref<32x128xf32, #tpu.memory_space<vmem>>, vector<16x128xf32>
    %c2 = arith.constant 2 : index
    %c0_31 = arith.constant 0 : index
    %c0_32 = arith.constant 0 : index
    %63 = vector.load %arg5[%c2, %c0_31, %c0_32] : memref<6x128x128xf32, #tpu.memory_space<vmem>>, vector<1x128x128xf32>
    %64 = vector.shape_cast %63 : vector<1x128x128xf32> to vector<128x128xf32>
    %cst_33 = arith.constant dense<0.000000e+00> : vector<16x128xf32>
    %65 = tpu.matmul %62, %64, %cst_33 {dimension_numbers = #tpu.dot_dimension_numbers<[1], [0], [0], [1], [0, 0, 1, 1], [], []>} : vector<16x128xf32>, vector<128x128xf32>, vector<16x128xf32> -> vector<16x128xf32>
    %66 = arith.addf %61, %65 : vector<16x128xf32>
    %c0_34 = arith.constant 0 : index
    %c0_35 = arith.constant 0 : index
    %c0_36 = arith.constant 0 : index
    %67 = vector.load %arg6[%c0_34, %c0_35, %c0_36] : memref<2x1x128xf32, #tpu.memory_space<vmem>>, vector<1x1x128xf32>
    %68 = vector.shape_cast %67 : vector<1x1x128xf32> to vector<1x128xf32>
    %69 = vector.broadcast %68 : vector<1x128xf32> to vector<16x128xf32>
    %70 = arith.addf %66, %69 : vector<16x128xf32>
    %cst_37 = arith.constant 0.577350259 : f32
    %71 = vector.broadcast %cst_37 : f32 to vector<16x128xf32>
    %72 = arith.mulf %70, %71 : vector<16x128xf32>
    %cst_38 = arith.constant 5.000000e-01 : f32
    %73 = vector.broadcast %cst_38 : f32 to vector<16x128xf32>
    %74 = arith.mulf %73, %72 : vector<16x128xf32>
    %cst_39 = arith.constant 4.471500e-02 : f32
    %75 = vector.broadcast %cst_39 : f32 to vector<16x128xf32>
    %76 = arith.mulf %75, %72 : vector<16x128xf32>
    %77 = arith.mulf %76, %72 : vector<16x128xf32>
    %78 = arith.mulf %77, %72 : vector<16x128xf32>
    %79 = arith.addf %72, %78 : vector<16x128xf32>
    %cst_40 = arith.constant 0.797884583 : f32
    %80 = vector.broadcast %cst_40 : f32 to vector<16x128xf32>
    %81 = arith.mulf %80, %79 : vector<16x128xf32>
    %82 = math.tanh %81 : vector<16x128xf32>
    %cst_41 = arith.constant 1.000000e+00 : f32
    %83 = vector.broadcast %cst_41 : f32 to vector<16x128xf32>
    %84 = arith.addf %83, %82 : vector<16x128xf32>
    %85 = arith.mulf %74, %84 : vector<16x128xf32>
    %c0_42 = arith.constant 0 : index
    %c0_43 = arith.constant 0 : index
    %c0_44 = arith.constant 0 : index
    %86 = vector.load %arg7[%c0_42, %c0_43, %c0_44] : memref<2x128x128xf32, #tpu.memory_space<vmem>>, vector<1x128x128xf32>
    %87 = vector.shape_cast %86 : vector<1x128x128xf32> to vector<128x128xf32>
    %cst_45 = arith.constant dense<0.000000e+00> : vector<16x128xf32>
    %88 = tpu.matmul %85, %87, %cst_45 {dimension_numbers = #tpu.dot_dimension_numbers<[1], [0], [0], [1], [0, 0, 1, 1], [], []>} : vector<16x128xf32>, vector<128x128xf32>, vector<16x128xf32> -> vector<16x128xf32>
    %c0_46 = arith.constant 0 : index
    %c0_47 = arith.constant 0 : index
    %c0_48 = arith.constant 0 : index
    %89 = vector.load %arg8[%c0_46, %c0_47, %c0_48] : memref<2x1x128xf32, #tpu.memory_space<vmem>>, vector<1x1x128xf32>
    %90 = vector.shape_cast %89 : vector<1x1x128xf32> to vector<1x128xf32>
    %91 = vector.broadcast %90 : vector<1x128xf32> to vector<16x128xf32>
    %92 = arith.addf %88, %91 : vector<16x128xf32>
    %93 = arith.addf %92, %21 : vector<16x128xf32>
    %94 = vector.broadcast %6 : vector<16x1xf32> to vector<16x128xf32>
    %95 = arith.mulf %93, %94 : vector<16x128xf32>
    %c0_49 = arith.constant 0 : index
    %c0_50 = arith.constant 0 : index
    %96 = vector.load %arg14[%c0_49, %c0_50] : memref<16x128xf32, #tpu.memory_space<vmem>>, vector<16x128xf32>
    tpu.vector_store %arg14[%c0_49, %c0_50], %95 {strides = array<i32>} : memref<16x128xf32, #tpu.memory_space<vmem>>, vector<16x128xf32>,
    %c0_51 = arith.constant 0 : index
    %c0_52 = arith.constant 0 : index
    %97 = vector.load %arg14[%c0_51, %c0_52] : memref<16x128xf32, #tpu.memory_space<vmem>>, vector<16x128xf32>
    %c1_53 = arith.constant 1 : index
    %c0_54 = arith.constant 0 : index
    %c0_55 = arith.constant 0 : index
    %98 = vector.load %arg3[%c1_53, %c0_54, %c0_55] : memref<2x1x128xf32, #tpu.memory_space<vmem>>, vector<1x1x128xf32>
    %99 = vector.shape_cast %98 : vector<1x1x128xf32> to vector<1x128xf32>
    %c1_56 = arith.constant 1 : index
    %c0_57 = arith.constant 0 : index
    %c0_58 = arith.constant 0 : index
    %100 = vector.load %arg4[%c1_56, %c0_57, %c0_58] : memref<2x1x128xf32, #tpu.memory_space<vmem>>, vector<1x1x128xf32>
    %101 = vector.shape_cast %100 : vector<1x1x128xf32> to vector<1x128xf32>
    %102 = vector.broadcast %15 : vector<1x128xf32> to vector<16x128xf32>
    %103 = arith.mulf %97, %102 : vector<16x128xf32>
    %cst_59 = arith.constant dense<0.000000e+00> : vector<16xf32>
    %104 = vector.multi_reduction <add>, %103, %cst_59 [1] : vector<16x128xf32> to vector<16xf32>
    %105 = vector.shape_cast %104 : vector<16xf32> to vector<16x1xf32>
    %cst_60 = arith.constant 1.250000e-01 : f32
    %106 = vector.broadcast %cst_60 : f32 to vector<16x1xf32>
    %107 = arith.mulf %105, %106 : vector<16x1xf32>
    %108 = vector.broadcast %107 : vector<16x1xf32> to vector<16x128xf32>
    %109 = arith.subf %103, %108 : vector<16x128xf32>
    %110 = vector.broadcast %15 : vector<1x128xf32> to vector<16x128xf32>
    %111 = arith.mulf %109, %110 : vector<16x128xf32>
    %112 = arith.mulf %111, %111 : vector<16x128xf32>
    %cst_61 = arith.constant dense<0.000000e+00> : vector<16xf32>
    %113 = vector.multi_reduction <add>, %112, %cst_61 [1] : vector<16x128xf32> to vector<16xf32>
    %114 = vector.shape_cast %113 : vector<16xf32> to vector<16x1xf32>
    %cst_62 = arith.constant 1.250000e-01 : f32
    %115 = vector.broadcast %cst_62 : f32 to vector<16x1xf32>
    %116 = arith.mulf %114, %115 : vector<16x1xf32>
    %cst_63 = arith.constant 9.99999974E-6 : f32
    %117 = vector.broadcast %cst_63 : f32 to vector<16x1xf32>
    %118 = arith.addf %116, %117 : vector<16x1xf32>
    %119 = math.rsqrt %118 : vector<16x1xf32>
    %120 = vector.broadcast %119 : vector<16x1xf32> to vector<16x128xf32>
    %121 = arith.mulf %109, %120 : vector<16x128xf32>
    %122 = vector.broadcast %99 : vector<1x128xf32> to vector<16x128xf32>
    %123 = arith.mulf %121, %122 : vector<16x128xf32>
    %124 = vector.broadcast %101 : vector<1x128xf32> to vector<16x128xf32>
    %125 = arith.addf %123, %124 : vector<16x128xf32>
    %126 = vector.broadcast %6 : vector<16x1xf32> to vector<16x128xf32>
    %127 = arith.mulf %125, %126 : vector<16x128xf32>
    %c8_64 = arith.constant 8 : index
    %c0_65 = arith.constant 0 : index
    %128 = vector.load %arg15[%c8_64, %c0_65] : memref<32x128xf32, #tpu.memory_space<vmem>>, vector<16x128xf32>
    tpu.vector_store %arg15[%c8_64, %c0_65], %127 {strides = array<i32>} : memref<32x128xf32, #tpu.memory_space<vmem>>, vector<16x128xf32>,
    %c7_66 = arith.constant 7 : index
    %c0_67 = arith.constant 0 : index
    %129 = vector.load %arg15[%c7_66, %c0_67] : memref<32x128xf32, #tpu.memory_space<vmem>>, vector<16x128xf32>
    %c3 = arith.constant 3 : index
    %c0_68 = arith.constant 0 : index
    %c0_69 = arith.constant 0 : index
    %130 = vector.load %arg5[%c3, %c0_68, %c0_69] : memref<6x128x128xf32, #tpu.memory_space<vmem>>, vector<1x128x128xf32>
    %131 = vector.shape_cast %130 : vector<1x128x128xf32> to vector<128x128xf32>
    %cst_70 = arith.constant dense<0.000000e+00> : vector<16x128xf32>
    %132 = tpu.matmul %129, %131, %cst_70 {dimension_numbers = #tpu.dot_dimension_numbers<[1], [0], [0], [1], [0, 0, 1, 1], [], []>} : vector<16x128xf32>, vector<128x128xf32>, vector<16x128xf32> -> vector<16x128xf32>
    %c8_71 = arith.constant 8 : index
    %c0_72 = arith.constant 0 : index
    %133 = vector.load %arg15[%c8_71, %c0_72] : memref<32x128xf32, #tpu.memory_space<vmem>>, vector<16x128xf32>
    %c4 = arith.constant 4 : index
    %c0_73 = arith.constant 0 : index
    %c0_74 = arith.constant 0 : index
    %134 = vector.load %arg5[%c4, %c0_73, %c0_74] : memref<6x128x128xf32, #tpu.memory_space<vmem>>, vector<1x128x128xf32>
    %135 = vector.shape_cast %134 : vector<1x128x128xf32> to vector<128x128xf32>
    %cst_75 = arith.constant dense<0.000000e+00> : vector<16x128xf32>
    %136 = tpu.matmul %133, %135, %cst_75 {dimension_numbers = #tpu.dot_dimension_numbers<[1], [0], [0], [1], [0, 0, 1, 1], [], []>} : vector<16x128xf32>, vector<128x128xf32>, vector<16x128xf32> -> vector<16x128xf32>
    %137 = arith.addf %132, %136 : vector<16x128xf32>
    %c9_76 = arith.constant 9 : index
    %c0_77 = arith.constant 0 : index
    %138 = vector.load %arg15[%c9_76, %c0_77] : memref<32x128xf32, #tpu.memory_space<vmem>>, vector<16x128xf32>
    %c5 = arith.constant 5 : index
    %c0_78 = arith.constant 0 : index
    %c0_79 = arith.constant 0 : index
    %139 = vector.load %arg5[%c5, %c0_78, %c0_79] : memref<6x128x128xf32, #tpu.memory_space<vmem>>, vector<1x128x128xf32>
    %140 = vector.shape_cast %139 : vector<1x128x128xf32> to vector<128x128xf32>
    %cst_80 = arith.constant dense<0.000000e+00> : vector<16x128xf32>
    %141 = tpu.matmul %138, %140, %cst_80 {dimension_numbers = #tpu.dot_dimension_numbers<[1], [0], [0], [1], [0, 0, 1, 1], [], []>} : vector<16x128xf32>, vector<128x128xf32>, vector<16x128xf32> -> vector<16x128xf32>
    %142 = arith.addf %137, %141 : vector<16x128xf32>
    %c1_81 = arith.constant 1 : index
    %c0_82 = arith.constant 0 : index
    %c0_83 = arith.constant 0 : index
    %143 = vector.load %arg6[%c1_81, %c0_82, %c0_83] : memref<2x1x128xf32, #tpu.memory_space<vmem>>, vector<1x1x128xf32>
    %144 = vector.shape_cast %143 : vector<1x1x128xf32> to vector<1x128xf32>
    %145 = vector.broadcast %144 : vector<1x128xf32> to vector<16x128xf32>
    %146 = arith.addf %142, %145 : vector<16x128xf32>
    %cst_84 = arith.constant 0.577350259 : f32
    %147 = vector.broadcast %cst_84 : f32 to vector<16x128xf32>
    %148 = arith.mulf %146, %147 : vector<16x128xf32>
    %cst_85 = arith.constant 5.000000e-01 : f32
    %149 = vector.broadcast %cst_85 : f32 to vector<16x128xf32>
    %150 = arith.mulf %149, %148 : vector<16x128xf32>
    %cst_86 = arith.constant 4.471500e-02 : f32
    %151 = vector.broadcast %cst_86 : f32 to vector<16x128xf32>
    %152 = arith.mulf %151, %148 : vector<16x128xf32>
    %153 = arith.mulf %152, %148 : vector<16x128xf32>
    %154 = arith.mulf %153, %148 : vector<16x128xf32>
    %155 = arith.addf %148, %154 : vector<16x128xf32>
    %cst_87 = arith.constant 0.797884583 : f32
    %156 = vector.broadcast %cst_87 : f32 to vector<16x128xf32>
    %157 = arith.mulf %156, %155 : vector<16x128xf32>
    %158 = math.tanh %157 : vector<16x128xf32>
    %cst_88 = arith.constant 1.000000e+00 : f32
    %159 = vector.broadcast %cst_88 : f32 to vector<16x128xf32>
    %160 = arith.addf %159, %158 : vector<16x128xf32>
    %161 = arith.mulf %150, %160 : vector<16x128xf32>
    %c1_89 = arith.constant 1 : index
    %c0_90 = arith.constant 0 : index
    %c0_91 = arith.constant 0 : index
    %162 = vector.load %arg7[%c1_89, %c0_90, %c0_91] : memref<2x128x128xf32, #tpu.memory_space<vmem>>, vector<1x128x128xf32>
    %163 = vector.shape_cast %162 : vector<1x128x128xf32> to vector<128x128xf32>
    %cst_92 = arith.constant dense<0.000000e+00> : vector<16x128xf32>
    %164 = tpu.matmul %161, %163, %cst_92 {dimension_numbers = #tpu.dot_dimension_numbers<[1], [0], [0], [1], [0, 0, 1, 1], [], []>} : vector<16x128xf32>, vector<128x128xf32>, vector<16x128xf32> -> vector<16x128xf32>
    %c1_93 = arith.constant 1 : index
    %c0_94 = arith.constant 0 : index
    %c0_95 = arith.constant 0 : index
    %165 = vector.load %arg8[%c1_93, %c0_94, %c0_95] : memref<2x1x128xf32, #tpu.memory_space<vmem>>, vector<1x1x128xf32>
    %166 = vector.shape_cast %165 : vector<1x1x128xf32> to vector<1x128xf32>
    %167 = vector.broadcast %166 : vector<1x128xf32> to vector<16x128xf32>
    %168 = arith.addf %164, %167 : vector<16x128xf32>
    %169 = arith.addf %168, %97 : vector<16x128xf32>
    %170 = vector.broadcast %6 : vector<16x1xf32> to vector<16x128xf32>
    %171 = arith.mulf %169, %170 : vector<16x128xf32>
    %c0_96 = arith.constant 0 : index
    %c0_97 = arith.constant 0 : index
    %172 = vector.load %arg14[%c0_96, %c0_97] : memref<16x128xf32, #tpu.memory_space<vmem>>, vector<16x128xf32>
    tpu.vector_store %arg14[%c0_96, %c0_97], %171 {strides = array<i32>} : memref<16x128xf32, #tpu.memory_space<vmem>>, vector<16x128xf32>,
    %c0_98 = arith.constant 0 : index
    %c0_99 = arith.constant 0 : index
    %173 = vector.load %arg14[%c0_98, %c0_99] : memref<16x128xf32, #tpu.memory_space<vmem>>, vector<16x128xf32>
    %c0_100 = arith.constant 0 : index
    %c0_101 = arith.constant 0 : index
    %174 = vector.load %arg9[%c0_100, %c0_101] : memref<1x128xf32, #tpu.memory_space<vmem>>, vector<1x128xf32>
    %c0_102 = arith.constant 0 : index
    %c0_103 = arith.constant 0 : index
    %175 = vector.load %arg10[%c0_102, %c0_103] : memref<1x128xf32, #tpu.memory_space<vmem>>, vector<1x128xf32>
    %176 = vector.broadcast %15 : vector<1x128xf32> to vector<16x128xf32>
    %177 = arith.mulf %173, %176 : vector<16x128xf32>
    %cst_104 = arith.constant dense<0.000000e+00> : vector<16xf32>
    %178 = vector.multi_reduction <add>, %177, %cst_104 [1] : vector<16x128xf32> to vector<16xf32>
    %179 = vector.shape_cast %178 : vector<16xf32> to vector<16x1xf32>
    %cst_105 = arith.constant 1.250000e-01 : f32
    %180 = vector.broadcast %cst_105 : f32 to vector<16x1xf32>
    %181 = arith.mulf %179, %180 : vector<16x1xf32>
    %182 = vector.broadcast %181 : vector<16x1xf32> to vector<16x128xf32>
    %183 = arith.subf %177, %182 : vector<16x128xf32>
    %184 = vector.broadcast %15 : vector<1x128xf32> to vector<16x128xf32>
    %185 = arith.mulf %183, %184 : vector<16x128xf32>
    %186 = arith.mulf %185, %185 : vector<16x128xf32>
    %cst_106 = arith.constant dense<0.000000e+00> : vector<16xf32>
    %187 = vector.multi_reduction <add>, %186, %cst_106 [1] : vector<16x128xf32> to vector<16xf32>
    %188 = vector.shape_cast %187 : vector<16xf32> to vector<16x1xf32>
    %cst_107 = arith.constant 1.250000e-01 : f32
    %189 = vector.broadcast %cst_107 : f32 to vector<16x1xf32>
    %190 = arith.mulf %188, %189 : vector<16x1xf32>
    %cst_108 = arith.constant 9.99999974E-6 : f32
    %191 = vector.broadcast %cst_108 : f32 to vector<16x1xf32>
    %192 = arith.addf %190, %191 : vector<16x1xf32>
    %193 = math.rsqrt %192 : vector<16x1xf32>
    %194 = vector.broadcast %193 : vector<16x1xf32> to vector<16x128xf32>
    %195 = arith.mulf %183, %194 : vector<16x128xf32>
    %196 = vector.broadcast %174 : vector<1x128xf32> to vector<16x128xf32>
    %197 = arith.mulf %195, %196 : vector<16x128xf32>
    %198 = vector.broadcast %175 : vector<1x128xf32> to vector<16x128xf32>
    %199 = arith.addf %197, %198 : vector<16x128xf32>
    %200 = vector.broadcast %10 : vector<16x1xf32> to vector<16x128xf32>
    %201 = arith.mulf %199, %200 : vector<16x128xf32>
    %c8_109 = arith.constant 8 : index
    %c0_110 = arith.constant 0 : index
    %202 = vector.load %arg15[%c8_109, %c0_110] : memref<32x128xf32, #tpu.memory_space<vmem>>, vector<16x128xf32>
    tpu.vector_store %arg15[%c8_109, %c0_110], %201 {strides = array<i32>} : memref<32x128xf32, #tpu.memory_space<vmem>>, vector<16x128xf32>,
    %c7_111 = arith.constant 7 : index
    %c0_112 = arith.constant 0 : index
    %203 = vector.load %arg15[%c7_111, %c0_112] : memref<32x128xf32, #tpu.memory_space<vmem>>, vector<16x128xf32>
    %c0_113 = arith.constant 0 : index
    %c0_114 = arith.constant 0 : index
    %c0_115 = arith.constant 0 : index
    %204 = vector.load %arg11[%c0_113, %c0_114, %c0_115] : memref<3x128x128xf32, #tpu.memory_space<vmem>>, vector<1x128x128xf32>
    %205 = vector.shape_cast %204 : vector<1x128x128xf32> to vector<128x128xf32>
    %cst_116 = arith.constant dense<0.000000e+00> : vector<16x128xf32>
    %206 = tpu.matmul %203, %205, %cst_116 {dimension_numbers = #tpu.dot_dimension_numbers<[1], [0], [0], [1], [0, 0, 1, 1], [], []>} : vector<16x128xf32>, vector<128x128xf32>, vector<16x128xf32> -> vector<16x128xf32>
    %c8_117 = arith.constant 8 : index
    %c0_118 = arith.constant 0 : index
    %207 = vector.load %arg15[%c8_117, %c0_118] : memref<32x128xf32, #tpu.memory_space<vmem>>, vector<16x128xf32>
    %c1_119 = arith.constant 1 : index
    %c0_120 = arith.constant 0 : index
    %c0_121 = arith.constant 0 : index
    %208 = vector.load %arg11[%c1_119, %c0_120, %c0_121] : memref<3x128x128xf32, #tpu.memory_space<vmem>>, vector<1x128x128xf32>
    %209 = vector.shape_cast %208 : vector<1x128x128xf32> to vector<128x128xf32>
    %cst_122 = arith.constant dense<0.000000e+00> : vector<16x128xf32>
    %210 = tpu.matmul %207, %209, %cst_122 {dimension_numbers = #tpu.dot_dimension_numbers<[1], [0], [0], [1], [0, 0, 1, 1], [], []>} : vector<16x128xf32>, vector<128x128xf32>, vector<16x128xf32> -> vector<16x128xf32>
    %211 = arith.addf %206, %210 : vector<16x128xf32>
    %c9_123 = arith.constant 9 : index
    %c0_124 = arith.constant 0 : index
    %212 = vector.load %arg15[%c9_123, %c0_124] : memref<32x128xf32, #tpu.memory_space<vmem>>, vector<16x128xf32>
    %c2_125 = arith.constant 2 : index
    %c0_126 = arith.constant 0 : index
    %c0_127 = arith.constant 0 : index
    %213 = vector.load %arg11[%c2_125, %c0_126, %c0_127] : memref<3x128x128xf32, #tpu.memory_space<vmem>>, vector<1x128x128xf32>
    %214 = vector.shape_cast %213 : vector<1x128x128xf32> to vector<128x128xf32>
    %cst_128 = arith.constant dense<0.000000e+00> : vector<16x128xf32>
    %215 = tpu.matmul %212, %214, %cst_128 {dimension_numbers = #tpu.dot_dimension_numbers<[1], [0], [0], [1], [0, 0, 1, 1], [], []>} : vector<16x128xf32>, vector<128x128xf32>, vector<16x128xf32> -> vector<16x128xf32>
    %216 = arith.addf %211, %215 : vector<16x128xf32>
    %c0_129 = arith.constant 0 : index
    %c0_130 = arith.constant 0 : index
    %217 = vector.load %arg12[%c0_129, %c0_130] : memref<1x128xf32, #tpu.memory_space<vmem>>, vector<1x128xf32>
    %218 = vector.broadcast %217 : vector<1x128xf32> to vector<16x128xf32>
    %219 = arith.addf %216, %218 : vector<16x128xf32>
    %c0_131 = arith.constant 0 : index
    %c0_132 = arith.constant 0 : index
    %c0_133 = arith.constant 0 : index
    %220 = vector.load %arg13[%c0_131, %c0_132, %c0_133] : memref<1x16x128xf32, #tpu.memory_space<vmem>>, vector<1x16x128xf32>
    %221 = vector.shape_cast %220 : vector<1x16x128xf32> to vector<16x128xf32>
    %222 = vector.shape_cast %219 : vector<16x128xf32> to vector<1x16x128xf32>
    tpu.vector_store %arg13[%c0_131, %c0_132, %c0_133], %222 {strides = array<i32>} : memref<1x16x128xf32, #tpu.memory_space<vmem>>, vector<1x16x128xf32>,
    return
  }
  func.func @transform_0(%arg0: i32, %arg1: memref<2xi32, #tpu.memory_space<smem>>) -> (i32, i32, i32) {
    %c0_i32 = arith.constant 0 : i32
    %c0_i32_0 = arith.constant 0 : i32
    %c0_i32_1 = arith.constant 0 : i32
    return %arg0, %c0_i32, %c0_i32_0 : i32, i32, i32
  }
  func.func @transform_1(%arg0: i32, %arg1: memref<2xi32, #tpu.memory_space<smem>>) -> (i32, i32, i32) {
    %c0_i32 = arith.constant 0 : i32
    %c0_i32_0 = arith.constant 0 : i32
    %c0_i32_1 = arith.constant 0 : i32
    %c0_i32_2 = arith.constant 0 : i32
    return %c0_i32, %c0_i32_0, %c0_i32_1 : i32, i32, i32
  }
  func.func @transform_2(%arg0: i32, %arg1: memref<2xi32, #tpu.memory_space<smem>>) -> (i32, i32, i32) {
    %c0_i32 = arith.constant 0 : i32
    %c0_i32_0 = arith.constant 0 : i32
    %c0_i32_1 = arith.constant 0 : i32
    %c0_i32_2 = arith.constant 0 : i32
    return %c0_i32, %c0_i32_0, %c0_i32_1 : i32, i32, i32
  }
  func.func @transform_3(%arg0: i32, %arg1: memref<2xi32, #tpu.memory_space<smem>>) -> (i32, i32, i32) {
    %c0_i32 = arith.constant 0 : i32
    %c0_i32_0 = arith.constant 0 : i32
    %c0_i32_1 = arith.constant 0 : i32
    %c0_i32_2 = arith.constant 0 : i32
    return %c0_i32, %c0_i32_0, %c0_i32_1 : i32, i32, i32
  }
  func.func @transform_4(%arg0: i32, %arg1: memref<2xi32, #tpu.memory_space<smem>>) -> (i32, i32, i32) {
    %c0_i32 = arith.constant 0 : i32
    %c0_i32_0 = arith.constant 0 : i32
    %c0_i32_1 = arith.constant 0 : i32
    %c0_i32_2 = arith.constant 0 : i32
    return %c0_i32, %c0_i32_0, %c0_i32_1 : i32, i32, i32
  }
  func.func @transform_5(%arg0: i32, %arg1: memref<2xi32, #tpu.memory_space<smem>>) -> (i32, i32, i32) {
    %c0_i32 = arith.constant 0 : i32
    %c0_i32_0 = arith.constant 0 : i32
    %c0_i32_1 = arith.constant 0 : i32
    %c0_i32_2 = arith.constant 0 : i32
    return %c0_i32, %c0_i32_0, %c0_i32_1 : i32, i32, i32
  }
  func.func @transform_6(%arg0: i32, %arg1: memref<2xi32, #tpu.memory_space<smem>>) -> (i32, i32, i32) {
    %c0_i32 = arith.constant 0 : i32
    %c0_i32_0 = arith.constant 0 : i32
    %c0_i32_1 = arith.constant 0 : i32
    %c0_i32_2 = arith.constant 0 : i32
    return %c0_i32, %c0_i32_0, %c0_i32_1 : i32, i32, i32
  }
  func.func @transform_7(%arg0: i32, %arg1: memref<2xi32, #tpu.memory_space<smem>>) -> (i32, i32) {
    %c0_i32 = arith.constant 0 : i32
    %c0_i32_0 = arith.constant 0 : i32
    %c0_i32_1 = arith.constant 0 : i32
    return %c0_i32, %c0_i32_0 : i32, i32
  }
  func.func @transform_8(%arg0: i32, %arg1: memref<2xi32, #tpu.memory_space<smem>>) -> (i32, i32) {
    %c0_i32 = arith.constant 0 : i32
    %c0_i32_0 = arith.constant 0 : i32
    %c0_i32_1 = arith.constant 0 : i32
    return %c0_i32, %c0_i32_0 : i32, i32
  }
  func.func @transform_9(%arg0: i32, %arg1: memref<2xi32, #tpu.memory_space<smem>>) -> (i32, i32, i32) {
    %c0_i32 = arith.constant 0 : i32
    %c0_i32_0 = arith.constant 0 : i32
    %c0_i32_1 = arith.constant 0 : i32
    %c0_i32_2 = arith.constant 0 : i32
    return %c0_i32, %c0_i32_0, %c0_i32_1 : i32, i32, i32
  }
  func.func @transform_10(%arg0: i32, %arg1: memref<2xi32, #tpu.memory_space<smem>>) -> (i32, i32) {
    %c0_i32 = arith.constant 0 : i32
    %c0_i32_0 = arith.constant 0 : i32
    %c0_i32_1 = arith.constant 0 : i32
    return %c0_i32, %c0_i32_0 : i32, i32
  }
  func.func @transform_11(%arg0: i32, %arg1: memref<2xi32, #tpu.memory_space<smem>>) -> (i32, i32, i32) {
    %c0_i32 = arith.constant 0 : i32
    %c0_i32_0 = arith.constant 0 : i32
    %c0_i32_1 = arith.constant 0 : i32
    return %arg0, %c0_i32, %c0_i32_0 : i32, i32, i32
  }
}

</mosaic_0001>

<bundles_post_ra>
// kernel: tpu_custom_call.1
= control target key start
LH: loop header
LB: loop body
LE: loop exit
PB: predicated region body
PF: predicated region fallthrough
CT: control target
= control target key end

     0   :  { %s2798_s21 = smov [#allocation5]   ;;  %s3200_s0 = inlined_call_operand.hbm [shape: s32[2], index: 0, kind: input, shape index: {}]   ;;  %s3201_s1 = inlined_call_operand.hbm [shape: f32[2,16,128], index: 1, kind: input, shape index: {}]   ;;  %s3202_s2 = inlined_call_operand.vmem [shape: f32[2,1,128], index: 2, kind: input, shape index: {}]   ;;  %s3203_s3 = inlined_call_operand.vmem [shape: f32[2,1,128], index: 3, kind: input, shape index: {}]   ;;  %s3204_s4 = inlined_call_operand.hbm [shape: f32[6,128,128], index: 4, kind: input, shape index: {}]   ;;  %s3205_s5 = inlined_call_operand.vmem [shape: f32[2,1,128], index: 5, kind: input, shape index: {}]   ;;  %s3206_s6 = inlined_call_operand.hbm [shape: f32[2,128,128], index: 6, kind: input, shape index: {}]   ;;  %s3207_s7 = inlined_call_operand.vmem [shape: f32[2,1,128], index: 7, kind: input, shape index: {}]   ;;  %s3208_s8 = inlined_call_operand.vmem [shape: f32[1,128], index: 8, kind: input, shape index: {}]   ;;  %s3209_s9 = inlined_call_operand.vmem [shape: f32[1,128], index: 9, kind: input, shape index: {}]   ;;  %s3210_s10 = inlined_call_operand.hbm [shape: f32[3,128,128], index: 10, kind: input, shape index: {}]   ;;  %s3211_s11 = inlined_call_operand.vmem [shape: f32[1,128], index: 11, kind: input, shape index: {}]   ;;  %s3212_s12 = inlined_call_operand.hbm [shape: f32[2,16,128], index: 12, kind: output, shape index: {}]  }
   0x1   :  { %3220 = sst [smem:[#allocation22_spill]] %s3204_s4 }
   0x2   :  { %3221 = sst [smem:[#allocation23_spill]] %s3206_s6 }
   0x3   :  { %3222 = sst [smem:[#allocation24_spill]] %s3210_s10 }
   0x4   :  { %18 = dma.hbm_to_smem %s3200_s0, 16, %s2798_s21, [#allocation4] }
   0x5   :  { %2764 = dma.done.wait [#allocation4], 16 }
   0x6   :  { %2765 = vsyncadd [#allocation4], 4294967280 }
   0x7   :  { %20 = sfence }
   0x8   :  { %21 = vsyncpa [#allocation7], 0 }
   0x9   :  { %23 = vsyncpa [#allocation7 + $0x1], 0 }
   0xa   :  { %24 = vsyncpa [#allocation10], 0 }
   0xb   :  { %25 = vsyncpa [#allocation13], 0 }
   0xc   :  { %26 = vsyncpa [#allocation8], 0 }
   0xd   :  { %28 = vsyncpa [#allocation8 + $0x1], 0  ;;  %s2877_s24 = smov 0   ;;  %s2879_s25 = smov 0  }
   0xe   :  { %s2881_s26 = smov 0   ;;  %s2883_s27 = smov 0  }
   0xf LB: > { %3223 = sst [smem:[#allocation20_spill]] %s2792_s26  ;;  %s2898_s0 = sadd.s32 4294967295, %s2796_s27   ;;  %s2796_s27 = sphi %s2883_s27, %s3249_s27   ;;  %s2792_s26 = sphi %s2881_s26, %s3246_s26   ;;  %s2788_s25 = sphi %s2879_s25, %s3248_s25   ;;  %s2784_s24 = sphi %s2877_s24, %s3247_s24  }
  0x10   : > { %s1882_s28 = sadd.s32 4294967294, %s2796_s27   ;;  %p54_p0 = scmp.ne.s32.totalorder %s2788_s25, %s2784_s24 }
  0x11   : > { %p3213_p1 = scmp.eq.s32.totalorder %s2898_s0, 0  ;;  %p288_p2 = scmp.eq.s32.totalorder %s2898_s0, 1 }
  0x12   : > { %p294_p3 = scmp.eq.s32.totalorder %s1882_s28, 1  ;;  %p1883_p5 = scmp.ge.s32.totalorder %s2796_s27, 1 }
  0x13   : > { %p2907_p4 = por %p3213_p1, %p54_p0  ;;  %p301_p7 = scmp.lt.s32.totalorder %s2796_s27, 3 }
  0x14   : > { %p2912_p6 = por %p294_p3, %p54_p0  ;;  %s2799_s14 = smov [#allocation9]  }
  0x15   : > { %s3224_s29 = scalar_select %p2907_p4, 1, 0 }
  0x16   : > { %s3225_s30 = scalar_select %p2912_p6, 1, 0 }
  0x17   : > { %p2917_p8 = pnand %p1883_p5, %p301_p7  ;;  %s319_s15 = sshll.u32 %s2799_s14, 4  ;;  %s320_s15 = int_to_ptr.vmem [resolvable:$true] %s319_s15 }
  0x18   : > { %s2800_s17 = smov [#allocation11]   ;;  %s2801_s19 = smov [#allocation12]  }
  0x19   : > { %s3226_s13 = scalar_select %p2917_p8, 1, 0 }
  0x1a   : > { %p2521_p9 = pneg %p2917_p8  ;;  %s335_s18 = sshll.u32 %s2800_s17, 4  ;;  %s336_s18 = int_to_ptr.vmem [resolvable:$true] %s335_s18 }
  0x1b   : > { %s357_s20 = sshll.u32 %s2801_s19, 4  ;;  %s2627_s21 = scalar_lea.vmem %s320_s15, 12288  ;;  %s358_s20 = int_to_ptr.vmem [resolvable:$true] %s357_s20 }
  0x1c   : > { %p2926_p11 = pnand %p2521_p9, %p3213_p1  ;;  %p2628_p13 = scmp.ne.s32.totalorder %s320_s15, %s2627_s21 }
  0x1d   : > { %p2635_p5 = scmp.lt.s32.totalorder %s320_s15, %s320_s15  ;;  %p2636_p7 = scmp.lt.s32.totalorder %s2627_s21, %s2627_s21 }
  0x1e   : > { %p2618_p12 = pneg %p2926_p11 }
  0x1f   : > { %p2637_p9 = por %p2636_p7, %p2635_p5 }
  0x20   : > { %p2630_p0 = pnand %p2628_p13, %p2618_p12 }
  0x22   : > { %p2631_p3 = pneg %p2630_p0 }
  0x24   : > { %p2638_p10 = pnand %p2637_p9, %p2631_p3 }
  0x26   : > { %2641 = shalt.err (!%p2638_p10)
}
  0x27   : > { %s3214_s22 = smov 128   ;;  %s3215_s23 = smov 8  }
  0x28   : > { %s3228_s4 = sld [smem:[#allocation22_spill]]  ;;  %s2653_s17 = scalar_lea.vmem %s336_s18, 4096 }
  0x29   : > { %p2654_p13 = scmp.ne.s32.totalorder %s336_s18, %s2653_s17  ;;  %p2661_p3 = scmp.lt.s32.totalorder %s336_s18, %s336_s18 }
  0x2a   : > { %p2662_p10 = scmp.lt.s32.totalorder %s2653_s17, %s2653_s17 }
  0x2b   : > { %p2656_p0 = pnand %p2654_p13, %p2618_p12 }
  0x2c   : > { %p2663_p7 = por %p2662_p10, %p2661_p3 }
  0x2d   : > { %p2657_p5 = pneg %p2656_p0 }
  0x2e   : > { %2524 = dma.hbm_to_vmem [thread:$0]  (!%p2926_p11), %s3228_s4, 12288, %s320_s15, [#allocation10], %s3214_s22, %s3214_s22, %s3215_s23  }
  0x2f   : > { %p2664_p9 = pnand %p2663_p7, %p2657_p5 }
  0x31   : > { %2667 = shalt.err (!%p2664_p9)
}
  0x32   : > { %s3229_s6 = sld [smem:[#allocation23_spill]]  ;;  %s2679_s15 = scalar_lea.vmem %s358_s20, 6144 }
  0x33   : > { %p2680_p1 = scmp.ne.s32.totalorder %s358_s20, %s2679_s15  ;;  %p2687_p3 = scmp.lt.s32.totalorder %s358_s20, %s358_s20 }
  0x34   : > { %p2688_p5 = scmp.lt.s32.totalorder %s2679_s15, %s2679_s15 }
  0x35   : > { %p2682_p13 = pnand %p2680_p1, %p2618_p12 }
  0x36   : > { %p2689_p10 = por %p2688_p5, %p2687_p3 }
  0x37   : > { %p2683_p0 = pneg %p2682_p13 }
  0x38   : > { %2527 = dma.hbm_to_vmem [thread:$0]  (!%p2926_p11), %s3229_s6, 4096, %s336_s18, [#allocation10], %s3214_s22, %s3214_s22, %s3215_s23  }
  0x39   : > { %p2690_p7 = pnand %p2689_p10, %p2683_p0 }
  0x3b   : > { %2693 = shalt.err (!%p2690_p7)
}
  0x3c   : > { %s3230_s10 = sld [smem:[#allocation24_spill]]  ;;  %s2966_s18 = sadd.s32 1, %s2796_s27  }
  0x3d   : > { %s38_s16 = ssub.s32 %s2796_s27, %s2966_s18  ;;  %s41_s17 = sadd.s32 1, %s2792_s26 }
  0x3e   : > { %p39_p1 = scmp.eq.s32.totalorder %s38_s16, 0  ;;  %p48_p12 = scmp.ne.s32.totalorder %s2792_s26, %s2788_s25 }
  0x3f   : > { %p49_p9 = scmp.eq.s32.totalorder %s2796_s27, 0  ;;  %p2542_p13 = scmp.lt.s32.totalorder %s2796_s27, 2 }
  0x40   : > { %s2976_s19 = scalar_select %p39_p1, %s2792_s26, %s41_s17  }
  0x41   : > { %p50_p0 = por %p49_p9, %p48_p12  ;;  %p2980_p3 = por %p288_p2, %p48_p12 }
  0x42   : > { %2530 = dma.hbm_to_vmem [thread:$0]  (!%p2926_p11), %s3230_s10, 6144, %s358_s20, [#allocation13], %s3214_s22, %s3214_s22, %s3215_s23  }
  0x43   : > { %3231 = sst [smem:[#allocation21_spill]] %s2976_s19  ;;  %s374_s15 = sand.u32 1, %s2792_s26  }
  0x44   : > { %s3232_s21 = scalar_select %p2980_p3, 1, 0 }
  0x45   : > { %s1920_s28 = sshll.u32 %s2796_s27, 8  ;;  %s1888_s20 = sshll.u32 %s374_s15, 4 }
  0x46   : > { %s2989_s23 = scalar_lea.hbm %s3201_s1, %s1920_s28  ;;  %s378_s16 = scalar_lea.vmem [#allocation6], %s1888_s20 }
  0x47   : > { %s385_s17 = sshll.u32 %s378_s16, 4  ;;  %p2991_p11 = pnand %p2542_p13, %p50_p0  ;;  %s2995_s17 = int_to_ptr.vmem [resolvable:$true] %s385_s17 }
  0x48   : > { %s2997_s6 = scalar_lea.sflag [#allocation7], %s374_s15  ;;  %s2694_s10 = scalar_lea.hbm %s2989_s23, 256 }
  0x49   : > { %p2695_p2 = scmp.ne.s32.totalorder %s2989_s23, %s2694_s10  ;;  %p2696_p5 = pneg %p2991_p11 }
  0x4a   : > { %s2699_s20 = scalar_lea.hbm %s3201_s1, 512  ;;  %p2700_p1 = scmp.lt.s32.totalorder %s2989_s23, %s3201_s1 }
  0x4b   : > { %p2697_p10 = pnand %p2696_p5, %p2695_p2  ;;  %p2701_p12 = scmp.lt.s32.totalorder %s2699_s20, %s2694_s10 }
  0x4d   : > { %p2698_p7 = pneg %p2697_p10  ;;  %p2702_p9 = por %p2701_p12, %p2700_p1 }
  0x4f   : > { %p2703_p13 = pnand %p2702_p9, %p2698_p7 }
  0x51   : > { %2706 = shalt.err (!%p2703_p13)
}
  0x52   : > { %s2707_s15 = scalar_lea.vmem %s2995_s17, 256  ;;  %s2804_s19 = smov [#allocation6]  }
  0x53   : > { %p2708_p0 = scmp.ne.s32.totalorder %s2995_s17, %s2707_s15  ;;  %s2712_s26 = sshll.u32 %s2804_s19, 4  ;;  %s2713_s26 = int_to_ptr.vmem [resolvable:$false] %s2712_s26 }
  0x54   : > { %s2714_s22 = scalar_lea.vmem %s2713_s26, 512  ;;  %p2715_p10 = scmp.lt.s32.totalorder %s2995_s17, %s2713_s26 }
  0x55   : > { %p2710_p6 = pnand %p2708_p0, %p2696_p5  ;;  %p2716_p3 = scmp.lt.s32.totalorder %s2714_s22, %s2707_s15 }
  0x57   : > { %p2711_p2 = pneg %p2710_p6  ;;  %p2717_p4 = por %p2716_p3, %p2715_p10 }
  0x59   : > { %p2718_p8 = pnand %p2717_p4, %p2711_p2 }
  0x5b   : > { %2721 = shalt.err (!%p2718_p8)
}
  0x5c   : > { %s3234_s10 = smov 8   ;;  %s3235_s28 = smov 128  }
  0x5d   : > { %2534 = dma.hbm_to_vmem [thread:$0]  (!%p2991_p11), %s2989_s23, 256, %s2995_s17, %s2997_s6, %s3235_s28, %s3235_s28, %s3234_s10  }
  0x5e   : > { %p3236_p6 = scmp.ne.s32.totalorder %s3226_s13, 0 }
  0x5f   : > { %s3024_s19 = sand.u32 (!%p3236_p6), 1, %s2788_s25   ;;  %p3237_p4 = scmp.ne.s32.totalorder (!%p3236_p6), %s3224_s29, 0 }
  0x60   : > { %397 = sbr.rel (%p3236_p6) target bundleno = 2228 (0x8b4), region = 64  ;;  %s1892_s26 = sshll.u32 (!%p3236_p6), %s3024_s19, 4 }
  0x61   : > { %s400_s20 = scalar_lea.sflag (!%p3236_p6), [#allocation7], %s3024_s19  ;;  %s403_s4 = scalar_lea.vmem (!%p3236_p6), [#allocation6], %s1892_s26 }
  0x65   : > { %2767 = dma.done.wait (%p3237_p4), %s400_s20, 256  }
  0x66   : > { %2769 = vsyncadd (%p3237_p4), %s400_s20, 4294967040  ;;  %p3238_p8 = scmp.eq.s32.totalorder %s2898_s0, 0 }
  0x68   : > { %2771 = dma.done.wait (%p3238_p8), [#allocation10], 16384   ;;  %p3239_p3 = pmov %p3238_p8 }
  0x6a   : > { %2773 = vsyncadd (%p3239_p3), [#allocation10], 4294950912  ;;  %p3240_p11 = pmov %p3239_p3 }
  0x6b   : > { %p3241_p5 = pmov %p3239_p3 }
  0x6c   : > { %2775 = dma.done.wait (%p3240_p11), [#allocation13], 6144  }
  0x6d   : > { %2777 = vsyncadd (%p3241_p5), [#allocation13], 4294961152  ;;  %v455_v0 = vlaneseq  ;;  %v2805_v1 = vmov 0.0   ;;  %v3048_v4 = vld [vmem:[%s403_s4] sm:$0xff]  ;;  %v3050_v5 = vld [vmem:[%s403_s4 + $0x8] sm:$0xff]  ;;  %s454_s6 = sld [smem:[#allocation5 + %s2898_s0]] }
  0x6e   : > { %480 = vst [vmem:[#allocation3] sm:$0xff] %v2805_v1  ;;  %483 = vst [vmem:[#allocation3 + $0x18] sm:$0xff] %v2805_v1  ;;  %v570_v18 = vld [vmem:[#allocation9 + $0xf8] sm:$0xff]  ;;  %v569_v19 = vld [vmem:[#allocation9 + $0xf0] sm:$0xff]  ;;  %s453_s28 = scalar_lea.vmem [#allocation14], %s1892_s26  ;;  %s1921_s4 = sshll.u32 %s2898_s0, 8 }
  0x6f   : > { %v472_v2 = vand.u32 127, %v455_v0  ;;  %2120 = vmatprep.subr.mxu0 %v570_v18  ;;  %v568_v20 = vld [vmem:[#allocation9 + $0xe8] sm:$0xff]  ;;  %v567_v21 = vld [vmem:[#allocation9 + $0xe0] sm:$0xff]  ;;  %v566_v22 = vld [vmem:[#allocation9 + $0xd8] sm:$0xff]  ;;  %v456_v57 = vshrl.u32 %v455_v0, 7  ;;  %s1780_s20 = sshll.u32 %s453_s28, 4  ;;  %s3157_s13 = scalar_lea.hbm %s3212_s12, %s1921_s4  ;;  %s3152_s20 = int_to_ptr.vmem [resolvable:$true] %s1780_s20 }
  0x70   : > { %2121 = vmatpush3.msra.mxu0 %v570_v18  ;;  %v551_v23 = vld [vmem:[#allocation9 + $0x78] sm:$0xff]  ;;  %v565_v24 = vld [vmem:[#allocation9 + $0xd0] sm:$0xff]  ;;  %v564_v26 = vld [vmem:[#allocation9 + $0xc8] sm:$0xff]  ;;  %s1767_s26 = scalar_lea.sflag [#allocation8], %s3024_s19  ;;  %s2722_s23 = scalar_lea.vmem %s3152_s20, 256 }
  0x71   : > { %vm473_vm0 = vcmp.lt.s32.totalorder %v472_v2, 8  ;;  %2122 = vmatprep.subr.mxu0 %v569_v19  ;;  %2155 = vmatprep.subr.mxu1 %v551_v23  ;;  %v550_v25 = vld [vmem:[#allocation9 + $0x70] sm:$0xff]  ;;  %v549_v27 = vld [vmem:[#allocation9 + $0x68] sm:$0xff]  ;;  %v563_v28 = vld [vmem:[#allocation9 + $0xc0] sm:$0xff]  ;;  %v457_v62 = vadd.s32 8, %v456_v57  ;;  %p2723_p7 = scmp.ne.s32.totalorder %s3152_s20, %s2722_s23  ;;  %p3242_p1 = scmp.ne.s32.totalorder %s3232_s21, 0 }
  0x72   : > { %v3046_v3 = vsel %vm473_vm0, 1.0, %v2805_v1  ;;  %2123 = vmatpush3.msra.mxu0 %v569_v19  ;;  %2156 = vmatpush3.msra.mxu1 %v551_v23  ;;  %v548_v29 = vld [vmem:[#allocation9 + $0x60] sm:$0xff]  ;;  %v562_v30 = vld [vmem:[#allocation9 + $0xb8] sm:$0xff]  ;;  %v561_v32 = vld [vmem:[#allocation9 + $0xb0] sm:$0xff]  ;;  %s2806_s0 = smov [#allocation14]  }
  0x73   : > { %v488_v6 = vmul.f32 %v3046_v3, %v3048_v4  ;;  %v489_v7 = vmul.f32 %v3046_v3, %v3050_v5  ;;  %2124 = vmatprep.subr.mxu0 %v568_v20  ;;  %2157 = vmatprep.subr.mxu1 %v550_v25  ;;  %v547_v31 = vld [vmem:[#allocation9 + $0x58] sm:$0xff]  ;;  %v546_v33 = vld [vmem:[#allocation9 + $0x50] sm:$0xff]  ;;  %v560_v34 = vld [vmem:[#allocation9 + $0xa8] sm:$0xff]  ;;  %v458_v58 = vstv %s454_s6  ;;  %p2724_p12 = pnand %p2723_p7, %p3242_p1  ;;  %s2726_s17 = sshll.u32 %s2806_s0, 4  ;;  %s2727_s17 = int_to_ptr.vmem [resolvable:$false] %s2726_s17 }
  0x74   : > { %2125 = vmatpush3.msra.mxu0 %v568_v20  ;;  %2158 = vmatpush3.msra.mxu1 %v550_v25  ;;  %v545_v35 = vld [vmem:[#allocation9 + $0x48] sm:$0xff]  ;;  %v559_v36 = vld [vmem:[#allocation9 + $0xa0] sm:$0xff]  ;;  %v558_v38 = vld [vmem:[#allocation9 + $0x98] sm:$0xff]  ;;  %vm459_vm1 = vcmp.lt.s32.totalorder %v456_v57, %v458_v58  ;;  %vm460_vm2 = vcmp.lt.s32.totalorder %v457_v62, %v458_v58  ;;  %s2728_s14 = scalar_lea.vmem %s2727_s17, 512  ;;  %p2729_p13 = scmp.lt.s32.totalorder %s3152_s20, %s2727_s17 }
  0x75   : > { %490 = vadd.xlane.f32.xlu0 %v488_v6  ;;  %2126 = vmatprep.subr.mxu0 %v567_v21  ;;  %v544_v37 = vld [vmem:[#allocation9 + $0x40] sm:$0xff]  ;;  %v543_v39 = vld [vmem:[#allocation9 + $0x38] sm:$0xff]  ;;  %v557_v40 = vld [vmem:[#allocation9 + $0x90] sm:$0xff]  ;;  %p2725_p9 = pneg %p2724_p12  ;;  %p2730_p0 = scmp.lt.s32.totalorder %s2728_s14, %s2722_s23 }
  0x76   : > { %2127 = vmatpush3.msra.mxu0 %v567_v21  ;;  %2159 = vmatprep.subr.mxu1 %v549_v27  ;;  %v542_v41 = vld [vmem:[#allocation9 + $0x30] sm:$0xff]  ;;  %v556_v42 = vld [vmem:[#allocation9 + $0x88] sm:$0xff]  ;;  %v555_v44 = vld [vmem:[#allocation9 + $0x80] sm:$0xff] }
  0x77   : > { %2128 = vmatprep.subr.mxu0 %v566_v22  ;;  %2160 = vmatpush3.msra.mxu1 %v549_v27  ;;  %v541_v43 = vld [vmem:[#allocation9 + $0x28] sm:$0xff]  ;;  %v540_v45 = vld [vmem:[#allocation9 + $0x20] sm:$0xff]  ;;  %v739_v46 = vld [vmem:[#allocation9 + $0x178] sm:$0xff]  ;;  %p2731_p2 = por %p2730_p0, %p2729_p13 }
  0x78   : > { %2129 = vmatpush3.msra.mxu0 %v566_v22  ;;  %2161 = vmatprep.subr.mxu1 %v548_v29  ;;  %v539_v47 = vld [vmem:[#allocation9 + $0x18] sm:$0xff]  ;;  %v538_v48 = vld [vmem:[#allocation9 + $0x10] sm:$0xff]  ;;  %v537_v49 = vld [vmem:[#allocation9 + $0x8] sm:$0xff] }
  0x79   : > { %492 = vadd.xlane.f32.xlu0 %v489_v7  ;;  %2130 = vmatprep.subr.mxu0 %v565_v24  ;;  %v536_v50 = vld [vmem:[#allocation9] sm:$0xff]  ;;  %v734_v20 = vld [vmem:[#allocation9 + $0x150] sm:$0xff]  ;;  %v733_v21 = vld [vmem:[#allocation9 + $0x148] sm:$0xff]  ;;  %p2732_p10 = pnand %p2731_p2, %p2725_p9 }
  0x7a   : > { %2131 = vmatpush3.msra.mxu0 %v565_v24  ;;  %2162 = vmatpush3.msra.mxu1 %v548_v29  ;;  %v1900_v60 = vld [vmem:[%s3202_s2] ss:$0 sm:$0xff]  ;;  %v731_v23 = vld [vmem:[#allocation9 + $0x138] sm:$0xff]  ;;  %v730_v24 = vld [vmem:[#allocation9 + $0x130] sm:$0xff] }
  0x7b   : > { %2132 = vmatprep.subr.mxu0 %v564_v26  ;;  %2163 = vmatprep.subr.mxu1 %v547_v31  ;;  %v1901_v63 = vld [vmem:[%s3203_s3] ss:$0 sm:$0xff]  ;;  %v729_v25 = vld [vmem:[#allocation9 + $0x128] sm:$0xff]  ;;  %v727_v27 = vld [vmem:[#allocation9 + $0x118] sm:$0xff] }
  0x7c   : > { %2133 = vmatpush3.msra.mxu0 %v564_v26  ;;  %2164 = vmatpush3.msra.mxu1 %v547_v31  ;;  %v732_v22 = vld [vmem:[#allocation9 + $0x140] sm:$0xff]  ;;  %v725_v29 = vld [vmem:[#allocation9 + $0x108] sm:$0xff] }
  0x7d   : > { %2134 = vmatprep.subr.mxu0 %v563_v28  ;;  %2165 = vmatprep.subr.mxu1 %v546_v33  ;;  %v728_v26 = vld [vmem:[#allocation9 + $0x120] sm:$0xff] }
  0x7e   : > { %2135 = vmatpush3.msra.mxu0 %v563_v28  ;;  %2166 = vmatpush3.msra.mxu1 %v546_v33  ;;  %v726_v28 = vld [vmem:[#allocation9 + $0x110] sm:$0xff] }
  0x7f   : > { %2136 = vmatprep.subr.mxu0 %v562_v30  ;;  %2167 = vmatprep.subr.mxu1 %v545_v35  ;;  %v860_v33 = vld [vmem:[#allocation11 + $0x70] sm:$0xff] }
  0x80   : > { %2137 = vmatpush3.msra.mxu0 %v562_v30  ;;  %2168 = vmatpush3.msra.mxu1 %v545_v35  ;;  %v724_v30 = vld [vmem:[#allocation9 + $0x100] sm:$0xff] }
  0x81   : > { %2138 = vmatprep.subr.mxu0 %v561_v32  ;;  %2169 = vmatprep.subr.mxu1 %v544_v37  ;;  %v858_v35 = vld [vmem:[#allocation11 + $0x60] sm:$0xff] }
  0x82   : > { %2139 = vmatpush3.msra.mxu0 %v561_v32  ;;  %2170 = vmatpush3.msra.mxu1 %v544_v37  ;;  %v861_v32 = vld [vmem:[#allocation11 + $0x78] sm:$0xff]  ;;  %v856_v37 = vld [vmem:[#allocation11 + $0x50] sm:$0xff] }
  0x83   : > { %2140 = vmatprep.subr.mxu0 %v560_v34  ;;  %2171 = vmatprep.subr.mxu1 %v543_v39 }
  0x84   : > { %2141 = vmatpush3.msra.mxu0 %v560_v34  ;;  %2172 = vmatpush3.msra.mxu1 %v543_v39  ;;  %v859_v34 = vld [vmem:[#allocation11 + $0x68] sm:$0xff]  ;;  %v854_v39 = vld [vmem:[#allocation11 + $0x40] sm:$0xff] }
  0x85   : > { %2142 = vmatprep.subr.mxu0 %v559_v36  ;;  %2173 = vmatprep.subr.mxu1 %v542_v41 }
  0x86   : > { %2143 = vmatpush3.msra.mxu0 %v559_v36  ;;  %2174 = vmatpush3.msra.mxu1 %v542_v41  ;;  %v857_v36 = vld [vmem:[#allocation11 + $0x58] sm:$0xff]  ;;  %v852_v41 = vld [vmem:[#allocation11 + $0x30] sm:$0xff] }
  0x87   : > { %2144 = vmatprep.subr.mxu0 %v558_v38  ;;  %2175 = vmatprep.subr.mxu1 %v541_v43 }
  0x88   : > { %2145 = vmatpush3.msra.mxu0 %v558_v38  ;;  %2176 = vmatpush3.msra.mxu1 %v541_v43  ;;  %v855_v38 = vld [vmem:[#allocation11 + $0x48] sm:$0xff]  ;;  %v850_v43 = vld [vmem:[#allocation11 + $0x20] sm:$0xff] }
  0x89   : > { %2146 = vmatprep.subr.mxu0 %v557_v40  ;;  %2177 = vmatprep.subr.mxu1 %v540_v45 }
  0x8a   : > { %2147 = vmatpush3.msra.mxu0 %v557_v40  ;;  %2178 = vmatpush3.msra.mxu1 %v540_v45  ;;  %v853_v40 = vld [vmem:[#allocation11 + $0x38] sm:$0xff]  ;;  %v848_v45 = vld [vmem:[#allocation11 + $0x10] sm:$0xff] }
  0x8b   : > { %2148 = vmatprep.subr.mxu0 %v556_v42  ;;  %2179 = vmatprep.subr.mxu1 %v539_v47 }
  0x8c   : > { %2149 = vmatpush3.msra.mxu0 %v556_v42  ;;  %2180 = vmatpush3.msra.mxu1 %v539_v47  ;;  %v851_v42 = vld [vmem:[#allocation11 + $0x28] sm:$0xff]  ;;  %v846_v47 = vld [vmem:[#allocation11] sm:$0xff] }
  0x8d   : > { %2150 = vmatprep.subr.mxu0 %v555_v44  ;;  %2181 = vmatprep.subr.mxu1 %v538_v48 }
  0x8e   : > { %2151 = vmatpush3.msra.mxu0 %v555_v44  ;;  %2182 = vmatpush3.msra.mxu1 %v538_v48  ;;  %v849_v44 = vld [vmem:[#allocation11 + $0x18] sm:$0xff] }
  0x8f   : > { %2190 = vmatprep.subr.mxu0 %v739_v46  ;;  %2183 = vmatprep.subr.mxu1 %v537_v49 }
  0x90   : > { %2184 = vmatpush3.msra.mxu1 %v537_v49 }
  0x91   : > { %2185 = vmatprep.subr.mxu1 %v536_v50 }
  0x92   : > { %2186 = vmatpush3.msra.mxu1 %v536_v50 }
  0x93   : > { %2225 = vmatprep.subr.mxu1 %v861_v32 }
  0xfe   : > { %v491_v8 = vpop.xlane.xlu0 %490 }
  0xff   : > { %v494_v9 = vmul.f32 0.125, %v491_v8 }
 0x101   : > { %v3056_v10 = vsub.f32 %v488_v6, %v494_v9 }
 0x102   : > { %v493_v11 = vpop.xlane.xlu0 %492 }
 0x103   : > { %v495_v12 = vmul.f32 0.125, %v493_v11  ;;  %v498_v13 = vmul.f32 %v3046_v3, %v3056_v10 }
 0x105   : > { %v3060_v14 = vsub.f32 %v489_v7, %v495_v12  ;;  %v500_v15 = vmul.f32 %v498_v13, %v498_v13  ;;  %v3074_v7 = vsel %vm459_vm1, 1.0, %v2805_v1  ;;  %v3079_v12 = vsel %vm460_vm2, 1.0, %v2805_v1  ;;  %v735_v1 = vld [vmem:[#allocation9 + $0x158] sm:$0xff] }
 0x107   : > { %502 = vadd.xlane.f32.xlu1 %v500_v15  ;;  %v499_v16 = vmul.f32 %v3046_v3, %v3060_v14  ;;  %v738_v15 = vld [vmem:[#allocation9 + $0x170] sm:$0xff] }
 0x109   : > { %v501_v17 = vmul.f32 %v499_v16, %v499_v16  ;;  %v737_v16 = vld [vmem:[#allocation9 + $0x168] sm:$0xff] }
 0x10b   : > { %504 = vadd.xlane.f32.xlu1 %v501_v17 }
 0x190   : > { %v503_v51 = vpop.xlane.xlu1 %502 }
 0x191   : > { %v506_v52 = vmul.f32 0.125, %v503_v51 }
 0x193   : > { %v508_v53 = vadd.f32 1e-05, %v506_v52 }
 0x194   : > { %v505_v54 = vpop.xlane.xlu1 %504 }
 0x195   : > { %2588 = vrsqrt.f32 %v508_v53  ;;  %v507_v55 = vmul.f32 0.125, %v505_v54  ;;  %v1902_v54 = vld [vmem:[%s3205_s5] ss:$0 sm:$0xff] }
 0x197   : > { %v509_v56 = vadd.f32 1e-05, %v507_v55 }
 0x199   : > { %2590 = vrsqrt.f32 %v509_v56 }
 0x1a2   : > { %v2589_v59 = vpop.eup %2588 }
 0x1a3   : > { %v512_v61 = vmul.f32 %v2589_v59, %v3056_v10 }
 0x1a5   : > { %v520_v2 = vmul.f32 %v1900_v60, %v512_v61 }
 0x1a6   : > { %v2591_v6 = vpop.eup %2590 }
 0x1a7   : > { %v528_v0 = vadd.f32 %v1901_v63, %v520_v2  ;;  %v513_v8 = vmul.f32 %v2591_v6, %v3060_v14  ;;  %v736_v14 = vld [vmem:[#allocation9 + $0x160] sm:$0xff] }
 0x1a9   : > { %v530_v9 = vmul.f32 %v3074_v7, %v528_v0  ;;  %v521_v11 = vmul.f32 %v1900_v60, %v513_v8 }
 0x1ab   : > { %532 = vst [vmem:[#allocation3 + $0x8] sm:$0xff] %v530_v9  ;;  %v529_v10 = vadd.f32 %v1901_v63, %v521_v11  ;;  %2152 = vmatprep.mubr.f32.mxu0 %v530_v9 }
 0x1ad   : > { %v531_v13 = vmul.f32 %v3079_v12, %v529_v10 }
 0x1af   : > { %533 = vst [vmem:[#allocation3 + $0x10] sm:$0xff] %v531_v13  ;;  %2153 = vmatmul.mubr.f32.vlgmr.msra.gmra.mxu0 %v531_v13 }
 0x1b0   : > { %2191 = vmatpush3.msra.mxu0 %v739_v46  ;;  %v847_v46 = vld [vmem:[#allocation11 + $0x8] sm:$0xff] }
 0x1b1   : > { %2192 = vmatprep.subr.mxu0 %v738_v15 }
 0x1b2   : > { %v534_v17 = vld [vmem:[#allocation3 + $0x7] sm:$0xff]  ;;  %2193 = vmatpush3.msra.mxu0 %v738_v15 }
 0x1b3   : > { %2187 = vmatprep.mubr.f32.mxu1 %v534_v17  ;;  %2194 = vmatprep.subr.mxu0 %v737_v16 }
 0x1b4   : > { %2195 = vmatpush3.msra.mxu0 %v737_v16 }
 0x1b5   : > { %2196 = vmatprep.subr.mxu0 %v736_v14 }
 0x1b6   : > { %v535_v18 = vld [vmem:[#allocation3 + $0xf] sm:$0xff]  ;;  %2197 = vmatpush3.msra.mxu0 %v736_v14 }
 0x1b7   : > { %v721_v19 = vld [vmem:[#allocation3 + $0x9] sm:$0xff]  ;;  %2188 = vmatmul.mubr.f32.vlgmr.msra.gmra.mxu1 %v535_v18  ;;  %2198 = vmatprep.subr.mxu0 %v735_v1  ;;  %v722_v31 = vld [vmem:[#allocation3 + $0x11] sm:$0xff] }
 0x1b8   : > { %2222 = vmatprep.mubr.f32.mxu0 %v721_v19  ;;  %2199 = vmatpush3.msra.mxu0 %v735_v1 }
 0x1b9   : > { %2200 = vmatprep.subr.mxu0 %v734_v20  ;;  %2226 = vmatpush3.msra.mxu1 %v861_v32 }
 0x1ba   : > { %2201 = vmatpush3.msra.mxu0 %v734_v20  ;;  %2227 = vmatprep.subr.mxu1 %v860_v33 }
 0x1bb   : > { %2202 = vmatprep.subr.mxu0 %v733_v21  ;;  %2228 = vmatpush3.msra.mxu1 %v860_v33 }
 0x1bc   : > { %2203 = vmatpush3.msra.mxu0 %v733_v21  ;;  %2229 = vmatprep.subr.mxu1 %v859_v34 }
 0x1bd   : > { %2204 = vmatprep.subr.mxu0 %v732_v22  ;;  %2230 = vmatpush3.msra.mxu1 %v859_v34 }
 0x1be   : > { %2205 = vmatpush3.msra.mxu0 %v732_v22  ;;  %2231 = vmatprep.subr.mxu1 %v858_v35  ;;  %v1903_v22 = vld [vmem:[%s3207_s7] ss:$0 sm:$0xff] }
 0x1bf   : > { %2206 = vmatprep.subr.mxu0 %v731_v23  ;;  %2232 = vmatpush3.msra.mxu1 %v858_v35 }
 0x1c0   : > { %2207 = vmatpush3.msra.mxu0 %v731_v23  ;;  %2233 = vmatprep.subr.mxu1 %v857_v36 }
 0x1c1   : > { %2208 = vmatprep.subr.mxu0 %v730_v24  ;;  %2234 = vmatpush3.msra.mxu1 %v857_v36 }
 0x1c2   : > { %2209 = vmatpush3.msra.mxu0 %v730_v24  ;;  %2235 = vmatprep.subr.mxu1 %v856_v37 }
 0x1c3   : > { %2210 = vmatprep.subr.mxu0 %v729_v25  ;;  %2236 = vmatpush3.msra.mxu1 %v856_v37 }
 0x1c4   : > { %2211 = vmatpush3.msra.mxu0 %v729_v25  ;;  %2237 = vmatprep.subr.mxu1 %v855_v38 }
 0x1c5   : > { %2212 = vmatprep.subr.mxu0 %v728_v26  ;;  %2238 = vmatpush3.msra.mxu1 %v855_v38 }
 0x1c6   : > { %2213 = vmatpush3.msra.mxu0 %v728_v26  ;;  %2239 = vmatprep.subr.mxu1 %v854_v39 }
 0x1c7   : > { %2214 = vmatprep.subr.mxu0 %v727_v27  ;;  %2240 = vmatpush3.msra.mxu1 %v854_v39 }
 0x1c8   : > { %2215 = vmatpush3.msra.mxu0 %v727_v27  ;;  %2241 = vmatprep.subr.mxu1 %v853_v40 }
 0x1c9   : > { %2216 = vmatprep.subr.mxu0 %v726_v28  ;;  %2242 = vmatpush3.msra.mxu1 %v853_v40 }
 0x1ca   : > { %2217 = vmatpush3.msra.mxu0 %v726_v28  ;;  %2243 = vmatprep.subr.mxu1 %v852_v41 }
 0x1cb   : > { %2218 = vmatprep.subr.mxu0 %v725_v29  ;;  %2244 = vmatpush3.msra.mxu1 %v852_v41  ;;  %v1039_v41 = vld [vmem:[#allocation9 + $0x278] sm:$0xff] }
 0x1cc   : > { %2219 = vmatpush3.msra.mxu0 %v725_v29  ;;  %2245 = vmatprep.subr.mxu1 %v851_v42 }
 0x1cd   : > { %2220 = vmatprep.subr.mxu0 %v724_v30  ;;  %2246 = vmatpush3.msra.mxu1 %v851_v42  ;;  %v1038_v42 = vld [vmem:[#allocation9 + $0x270] sm:$0xff] }
 0x1ce   : > { %2221 = vmatpush3.msra.mxu0 %v724_v30  ;;  %2247 = vmatprep.subr.mxu1 %v850_v43 }
 0x1cf   : > { %2223 = vmatmul.mubr.f32.vlgmr.msra.gmra.mxu0 %v722_v31  ;;  %2248 = vmatpush3.msra.mxu1 %v850_v43  ;;  %v1037_v43 = vld [vmem:[#allocation9 + $0x268] sm:$0xff] }
 0x1d0   : > { %2249 = vmatprep.subr.mxu1 %v849_v44  ;;  %2260 = vmatprep.subr.mxu0 %v1039_v41 }
 0x1d1   : > { %2250 = vmatpush3.msra.mxu1 %v849_v44  ;;  %2261 = vmatpush3.msra.mxu0 %v1039_v41  ;;  %v1036_v44 = vld [vmem:[#allocation9 + $0x260] sm:$0xff]  ;;  %v1202_v41 = vld [vmem:[#allocation9 + $0x2c8] sm:$0xff] }
 0x1d2   : > { %2251 = vmatprep.subr.mxu1 %v848_v45  ;;  %2262 = vmatprep.subr.mxu0 %v1038_v42 }
 0x1d3   : > { %2252 = vmatpush3.msra.mxu1 %v848_v45  ;;  %2263 = vmatpush3.msra.mxu0 %v1038_v42  ;;  %v1035_v45 = vld [vmem:[#allocation9 + $0x258] sm:$0xff]  ;;  %v1201_v42 = vld [vmem:[#allocation9 + $0x2c0] sm:$0xff] }
 0x1d4   : > { %2253 = vmatprep.subr.mxu1 %v847_v46  ;;  %2264 = vmatprep.subr.mxu0 %v1037_v43 }
 0x1d5   : > { %2254 = vmatpush3.msra.mxu1 %v847_v46  ;;  %2265 = vmatpush3.msra.mxu0 %v1037_v43  ;;  %v1020_v46 = vld [vmem:[#allocation9 + $0x1f8] sm:$0xff] }
 0x1d6   : > { %2255 = vmatprep.subr.mxu1 %v846_v47  ;;  %2266 = vmatprep.subr.mxu0 %v1036_v44  ;;  %v1200_v43 = vld [vmem:[#allocation9 + $0x2b8] sm:$0xff] }
 0x1d7   : > { %2256 = vmatpush3.msra.mxu1 %v846_v47  ;;  %2267 = vmatpush3.msra.mxu0 %v1036_v44  ;;  %v1034_v47 = vld [vmem:[#allocation9 + $0x250] sm:$0xff] }
 0x1d8   : > { %2268 = vmatprep.subr.mxu0 %v1035_v45  ;;  %2295 = vmatprep.subr.mxu1 %v1020_v46  ;;  %v1199_v44 = vld [vmem:[#allocation9 + $0x2b0] sm:$0xff] }
 0x1d9   : > { %2269 = vmatpush3.msra.mxu0 %v1035_v45  ;;  %v1198_v45 = vld [vmem:[#allocation9 + $0x2a8] sm:$0xff] }
 0x1da   : > { %2270 = vmatprep.subr.mxu0 %v1034_v47 }
 0x1db   : > { %2271 = vmatpush3.msra.mxu0 %v1034_v47  ;;  %v1196_v47 = vld [vmem:[#allocation9 + $0x298] sm:$0xff] }
 0x26f   : > { %v2154_v48 = vpop.f32.mrf.mxu0 }
 0x271   : > { %v637_v50 = vpop.f32.mrf.mxu0 }
 0x277   : > { %v2189_v49 = vpop.f32.mrf.mxu1 }
 0x278   : > { %v718_v52 = vadd.f32 %v2189_v49, %v2154_v48  ;;  %v1019_v48 = vld [vmem:[#allocation9 + $0x1f0] sm:$0xff]  ;;  %v1033_v49 = vld [vmem:[#allocation9 + $0x248] sm:$0xff] }
 0x279   : > { %v712_v51 = vpop.f32.mrf.mxu1  ;;  %2272 = vmatprep.subr.mxu0 %v1033_v49 }
 0x27a   : > { %v713_v55 = vadd.f32 %v712_v51, %v637_v50  ;;  %v1018_v50 = vld [vmem:[#allocation9 + $0x1e8] sm:$0xff]  ;;  %2273 = vmatpush3.msra.mxu0 %v1033_v49  ;;  %v1032_v51 = vld [vmem:[#allocation9 + $0x240] sm:$0xff] }
 0x27b   : > { %2274 = vmatprep.subr.mxu0 %v1032_v51  ;;  %v1194_v49 = vld [vmem:[#allocation9 + $0x288] sm:$0xff] }
 0x27c   : > { %2275 = vmatpush3.msra.mxu0 %v1032_v51 }
 0x28f   : > { %v2224_v53 = vpop.f32.mrf.mxu0 }
 0x290   : > { %v816_v56 = vadd.f32 %v2224_v53, %v718_v52  ;;  %v1017_v52 = vld [vmem:[#allocation9 + $0x1e0] sm:$0xff]  ;;  %v1031_v53 = vld [vmem:[#allocation9 + $0x238] sm:$0xff] }
 0x291   : > { %v806_v57 = vpop.f32.mrf.mxu0  ;;  %2276 = vmatprep.subr.mxu0 %v1031_v53 }
 0x292   : > { %v825_v58 = vadd.f32 %v1902_v54, %v816_v56  ;;  %v815_v59 = vadd.f32 %v806_v57, %v713_v55  ;;  %2277 = vmatpush3.msra.mxu0 %v1031_v53  ;;  %v1030_v55 = vld [vmem:[#allocation9 + $0x230] sm:$0xff]  ;;  %v1029_v57 = vld [vmem:[#allocation9 + $0x228] sm:$0xff] }
 0x293   : > { %v1015_v56 = vld [vmem:[#allocation9 + $0x1d0] sm:$0xff]  ;;  %2278 = vmatprep.subr.mxu0 %v1030_v55 }
 0x294   : > { %v827_v60 = vmul.f32 0.57735026, %v825_v58  ;;  %v824_v61 = vadd.f32 %v1902_v54, %v815_v59  ;;  %v1016_v54 = vld [vmem:[#allocation9 + $0x1d8] sm:$0xff]  ;;  %2279 = vmatpush3.msra.mxu0 %v1030_v55  ;;  %v1014_v58 = vld [vmem:[#allocation9 + $0x1c8] sm:$0xff]  ;;  %v1028_v59 = vld [vmem:[#allocation9 + $0x220] sm:$0xff] }
 0x295   : > { %2280 = vmatprep.subr.mxu0 %v1029_v57  ;;  %v1331_v53 = vld [vmem:[#allocation11 + $0xf0] sm:$0xff]  ;;  %v1329_v55 = vld [vmem:[#allocation11 + $0xe0] sm:$0xff] }
 0x296   : > { %v831_v62 = vmul.f32 0.044715, %v827_v60  ;;  %v826_v63 = vmul.f32 0.57735026, %v824_v61  ;;  %v829_v19 = vmul.f32 0.5, %v827_v60  ;;  %2281 = vmatpush3.msra.mxu0 %v1029_v57  ;;  %v1027_v61 = vld [vmem:[#allocation9 + $0x218] sm:$0xff] }
 0x297   : > { %2282 = vmatprep.subr.mxu0 %v1028_v59  ;;  %v1327_v57 = vld [vmem:[#allocation11 + $0xd0] sm:$0xff] }
 0x298   : > { %v833_v2 = vmul.f32 %v831_v62, %v827_v60  ;;  %v830_v6 = vmul.f32 0.044715, %v826_v63  ;;  %v828_v1 = vmul.f32 0.5, %v826_v63  ;;  %2283 = vmatpush3.msra.mxu0 %v1028_v59  ;;  %v1012_v62 = vld [vmem:[#allocation9 + $0x1b8] sm:$0xff]  ;;  %v1325_v59 = vld [vmem:[#allocation11 + $0xc0] sm:$0xff] }
 0x299   : > { %2284 = vmatprep.subr.mxu0 %v1027_v61 }
 0x29a   : > { %v835_v0 = vmul.f32 %v833_v2, %v827_v60  ;;  %v832_v8 = vmul.f32 %v830_v6, %v826_v63  ;;  %2285 = vmatpush3.msra.mxu0 %v1027_v61  ;;  %v1011_v2 = vld [vmem:[#allocation9 + $0x1b0] sm:$0xff]  ;;  %v1025_v6 = vld [vmem:[#allocation9 + $0x208] sm:$0xff] }
 0x29b   : > { %v1323_v61 = vld [vmem:[#allocation11 + $0xb0] sm:$0xff] }
 0x29c   : > { %v834_v9 = vmul.f32 %v832_v8, %v826_v63  ;;  %v837_v11 = vadd.f32 %v835_v0, %v827_v60  ;;  %v1013_v60 = vld [vmem:[#allocation9 + $0x1c0] sm:$0xff]  ;;  %v1010_v0 = vld [vmem:[#allocation9 + $0x1a8] sm:$0xff] }
 0x29d   : > { %v1024_v8 = vld [vmem:[#allocation9 + $0x200] sm:$0xff] }
 0x29e   : > { %v836_v10 = vadd.f32 %v834_v9, %v826_v63  ;;  %v839_v13 = vmul.f32 0.7978846, %v837_v11  ;;  %v1026_v63 = vld [vmem:[#allocation9 + $0x210] sm:$0xff]  ;;  %v1009_v9 = vld [vmem:[#allocation9 + $0x1a0] sm:$0xff]  ;;  %v1208_v11 = vld [vmem:[#allocation9 + $0x2f8] sm:$0xff] }
 0x29f   : > { %2286 = vmatprep.subr.mxu0 %v1026_v63 }
 0x2a0   : > { %v838_v15 = vmul.f32 0.7978846, %v836_v10  ;;  %2592 = vtanh.f32 %v839_v13  ;;  %2287 = vmatpush3.msra.mxu0 %v1026_v63  ;;  %v1008_v10 = vld [vmem:[#allocation9 + $0x198] sm:$0xff]  ;;  %v1007_v13 = vld [vmem:[#allocation9 + $0x190] sm:$0xff]  ;;  %v1321_v63 = vld [vmem:[#allocation11 + $0xa0] sm:$0xff] }
 0x2a1   : > { %2288 = vmatprep.subr.mxu0 %v1025_v6 }
 0x2a2   : > { %2594 = vtanh.f32 %v838_v15  ;;  %2289 = vmatpush3.msra.mxu0 %v1025_v6  ;;  %v1006_v15 = vld [vmem:[#allocation9 + $0x188] sm:$0xff]  ;;  %v1319_v6 = vld [vmem:[#allocation11 + $0x90] sm:$0xff] }
 0x2a3   : > { %2290 = vmatprep.subr.mxu0 %v1024_v8 }
 0x2a4   : > { %2291 = vmatpush3.msra.mxu0 %v1024_v8  ;;  %v1317_v8 = vld [vmem:[#allocation11 + $0x80] sm:$0xff] }
 0x2a5   : > { %2330 = vmatprep.subr.mxu0 %v1208_v11 }
 0x2ad   : > { %v2593_v16 = vpop.eup %2592 }
 0x2ae   : > { %v843_v14 = vadd.f32 1.0, %v2593_v16  ;;  %v1005_v16 = vld [vmem:[#allocation9 + $0x180] sm:$0xff] }
 0x2af   : > { %v2595_v17 = vpop.eup %2594 }
 0x2b0   : > { %v842_v18 = vadd.f32 1.0, %v2595_v17  ;;  %v845_v21 = vmul.f32 %v843_v14, %v829_v19 }
 0x2b2   : > { %v844_v20 = vmul.f32 %v842_v18, %v828_v1 }
 0x2b4   : > { %2257 = vmatprep.mubr.f32.mxu1 %v844_v20 }
 0x2b5   : > { %2258 = vmatmul.mubr.f32.vlgmr.msra.gmra.mxu1 %v845_v21 }
 0x2b6   : > { %2296 = vmatpush3.msra.mxu1 %v1020_v46  ;;  %v1197_v46 = vld [vmem:[#allocation9 + $0x2a0] sm:$0xff] }
 0x2b7   : > { %2297 = vmatprep.subr.mxu1 %v1019_v48 }
 0x2b8   : > { %2298 = vmatpush3.msra.mxu1 %v1019_v48  ;;  %v1195_v48 = vld [vmem:[#allocation9 + $0x290] sm:$0xff] }
 0x2b9   : > { %2299 = vmatprep.subr.mxu1 %v1018_v50 }
 0x2ba   : > { %2300 = vmatpush3.msra.mxu1 %v1018_v50  ;;  %v1193_v50 = vld [vmem:[#allocation9 + $0x280] sm:$0xff] }
 0x2bb   : > { %2301 = vmatprep.subr.mxu1 %v1017_v52 }
 0x2bc   : > { %2302 = vmatpush3.msra.mxu1 %v1017_v52  ;;  %v1332_v52 = vld [vmem:[#allocation11 + $0xf8] sm:$0xff] }
 0x2bd   : > { %2303 = vmatprep.subr.mxu1 %v1016_v54 }
 0x2be   : > { %2304 = vmatpush3.msra.mxu1 %v1016_v54  ;;  %v1330_v54 = vld [vmem:[#allocation11 + $0xe8] sm:$0xff] }
 0x2bf   : > { %2305 = vmatprep.subr.mxu1 %v1015_v56 }
 0x2c0   : > { %2306 = vmatpush3.msra.mxu1 %v1015_v56  ;;  %v1328_v56 = vld [vmem:[#allocation11 + $0xd8] sm:$0xff] }
 0x2c1   : > { %2307 = vmatprep.subr.mxu1 %v1014_v58 }
 0x2c2   : > { %2308 = vmatpush3.msra.mxu1 %v1014_v58  ;;  %v1326_v58 = vld [vmem:[#allocation11 + $0xc8] sm:$0xff] }
 0x2c3   : > { %2309 = vmatprep.subr.mxu1 %v1013_v60 }
 0x2c4   : > { %2310 = vmatpush3.msra.mxu1 %v1013_v60  ;;  %v1324_v60 = vld [vmem:[#allocation11 + $0xb8] sm:$0xff] }
 0x2c5   : > { %2311 = vmatprep.subr.mxu1 %v1012_v62 }
 0x2c6   : > { %2312 = vmatpush3.msra.mxu1 %v1012_v62  ;;  %v1322_v62 = vld [vmem:[#allocation11 + $0xa8] sm:$0xff] }
 0x2c7   : > { %2313 = vmatprep.subr.mxu1 %v1011_v2 }
 0x2c8   : > { %2314 = vmatpush3.msra.mxu1 %v1011_v2  ;;  %v1320_v2 = vld [vmem:[#allocation11 + $0x98] sm:$0xff] }
 0x2c9   : > { %2315 = vmatprep.subr.mxu1 %v1010_v0 }
 0x2ca   : > { %2316 = vmatpush3.msra.mxu1 %v1010_v0  ;;  %v1318_v0 = vld [vmem:[#allocation11 + $0x88] sm:$0xff] }
 0x2cb   : > { %2317 = vmatprep.subr.mxu1 %v1009_v9 }
 0x2cc   : > { %2318 = vmatpush3.msra.mxu1 %v1009_v9 }
 0x2cd   : > { %2319 = vmatprep.subr.mxu1 %v1008_v10 }
 0x2ce   : > { %2320 = vmatpush3.msra.mxu1 %v1008_v10 }
 0x2cf   : > { %2321 = vmatprep.subr.mxu1 %v1007_v13 }
 0x2d0   : > { %2322 = vmatpush3.msra.mxu1 %v1007_v13 }
 0x2d1   : > { %2323 = vmatprep.subr.mxu1 %v1006_v15 }
 0x2d2   : > { %2324 = vmatpush3.msra.mxu1 %v1006_v15 }
 0x2d3   : > { %2325 = vmatprep.subr.mxu1 %v1005_v16 }
 0x2d4   : > { %2326 = vmatpush3.msra.mxu1 %v1005_v16 }
 0x2d5   : > { %2365 = vmatprep.subr.mxu1 %v1332_v52 }
 0x375   : > { %v2259_v23 = vpop.f32.mrf.mxu1 }
 0x376   : > { %v941_v24 = vadd.f32 %v2259_v23, %v1903_v22 }
 0x377   : > { %v935_v25 = vpop.f32.mrf.mxu1 }
 0x378   : > { %v945_v26 = vadd.f32 %v941_v24, %v3050_v5  ;;  %v936_v27 = vadd.f32 %v1903_v22, %v935_v25  ;;  %v1906_v22 = vld [vmem:[%s3202_s2 + $0x1] ss:$0 sm:$0xff] }
 0x379   : > { %v1907_v25 = vld [vmem:[%s3203_s3 + $0x1] ss:$0 sm:$0xff] }
 0x37a   : > { %v944_v28 = vadd.f32 %v936_v27, %v3048_v4  ;;  %v3091_v29 = vmul.f32 %v3079_v12, %v945_v26 }
 0x37c   : > { %v957_v30 = vmul.f32 %v3046_v3, %v3091_v29  ;;  %v3096_v31 = vmul.f32 %v3074_v7, %v944_v28 }
 0x37e   : > { %960 = vadd.xlane.f32.xlu1 %v957_v30  ;;  %v956_v32 = vmul.f32 %v3046_v3, %v3096_v31 }
 0x380   : > { %958 = vadd.xlane.f32.xlu0 %v956_v32 }
 0x407   : > { %v961_v33 = vpop.xlane.xlu1 %960 }
 0x408   : > { %v963_v34 = vmul.f32 0.125, %v961_v33 }
 0x409   : > { %v959_v5 = vpop.xlane.xlu0 %958 }
 0x40a   : > { %v3100_v35 = vsub.f32 %v957_v30, %v963_v34  ;;  %v962_v4 = vmul.f32 0.125, %v959_v5  ;;  %v1207_v5 = vld [vmem:[#allocation9 + $0x2f0] sm:$0xff] }
 0x40c   : > { %v3102_v36 = vsub.f32 %v956_v32, %v962_v4  ;;  %v967_v37 = vmul.f32 %v3046_v3, %v3100_v35  ;;  %v1205_v4 = vld [vmem:[#allocation9 + $0x2e0] sm:$0xff] }
 0x40e   : > { %v969_v38 = vmul.f32 %v967_v37, %v967_v37  ;;  %v966_v39 = vmul.f32 %v3046_v3, %v3102_v36 }
 0x410   : > { %972 = vadd.xlane.f32.xlu1 %v969_v38  ;;  %v968_v40 = vmul.f32 %v966_v39, %v966_v39 }
 0x412   : > { %970 = vadd.xlane.f32.xlu0 %v968_v40  ;;  %v1203_v40 = vld [vmem:[#allocation9 + $0x2d0] sm:$0xff] }
 0x499   : > { %v973_v17 = vpop.xlane.xlu1 %972 }
 0x49a   : > { %v975_v14 = vmul.f32 0.125, %v973_v17  ;;  %v1909_v17 = vld [vmem:[%s3205_s5 + $0x1] ss:$0 sm:$0xff] }
 0x49b   : > { %v971_v1 = vpop.xlane.xlu0 %970 }
 0x49c   : > { %v977_v18 = vadd.f32 1e-05, %v975_v14  ;;  %v974_v19 = vmul.f32 0.125, %v971_v1 }
 0x49e   : > { %2596 = vrsqrt.f32 %v977_v18  ;;  %v976_v20 = vadd.f32 1e-05, %v974_v19 }
 0x4a0   : > { %2598 = vrsqrt.f32 %v976_v20 }
 0x4ab   : > { %v2597_v21 = vpop.eup %2596 }
 0x4ac   : > { %v981_v23 = vmul.f32 %v2597_v21, %v3100_v35  ;;  %v1206_v35 = vld [vmem:[#allocation9 + $0x2e8] sm:$0xff] }
 0x4ad   : > { %v2599_v24 = vpop.eup %2598 }
 0x4ae   : > { %v989_v26 = vmul.f32 %v1906_v22, %v981_v23  ;;  %v980_v27 = vmul.f32 %v2599_v24, %v3102_v36  ;;  %v1204_v36 = vld [vmem:[#allocation9 + $0x2d8] sm:$0xff] }
 0x4b0   : > { %v997_v28 = vadd.f32 %v1907_v25, %v989_v26  ;;  %v988_v30 = vmul.f32 %v1906_v22, %v980_v27 }
 0x4b2   : > { %v999_v32 = vmul.f32 %v3079_v12, %v997_v28  ;;  %v996_v33 = vadd.f32 %v1907_v25, %v988_v30 }
 0x4b4   : > { %1001 = vst [vmem:[#allocation3 + $0x10] sm:$0xff] %v999_v32  ;;  %v998_v34 = vmul.f32 %v3074_v7, %v996_v33 }
 0x4b6   : > { %1000 = vst [vmem:[#allocation3 + $0x8] sm:$0xff] %v998_v34  ;;  %2292 = vmatprep.mubr.f32.mxu0 %v998_v34 }
 0x4b7   : > { %2293 = vmatmul.mubr.f32.vlgmr.msra.gmra.mxu0 %v999_v32 }
 0x4b8   : > { %2331 = vmatpush3.msra.mxu0 %v1208_v11 }
 0x4b9   : > { %2332 = vmatprep.subr.mxu0 %v1207_v5 }
 0x4ba   : > { %2333 = vmatpush3.msra.mxu0 %v1207_v5 }
 0x4bb   : > { %2334 = vmatprep.subr.mxu0 %v1206_v35  ;;  %v1191_v51 = vld [vmem:[#allocation3 + $0x11] sm:$0xff] }
 0x4bc   : > { %2335 = vmatpush3.msra.mxu0 %v1206_v35 }
 0x4bd   : > { %v1002_v37 = vld [vmem:[#allocation3 + $0x7] sm:$0xff]  ;;  %v1003_v38 = vld [vmem:[#allocation3 + $0xf] sm:$0xff]  ;;  %2336 = vmatprep.subr.mxu0 %v1205_v4 }
 0x4be   : > { %v1190_v39 = vld [vmem:[#allocation3 + $0x9] sm:$0xff]  ;;  %2327 = vmatprep.mubr.f32.mxu1 %v1002_v37  ;;  %2337 = vmatpush3.msra.mxu0 %v1205_v4 }
 0x4bf   : > { %2362 = vmatprep.mubr.f32.mxu0 %v1190_v39  ;;  %2328 = vmatmul.mubr.f32.vlgmr.msra.gmra.mxu1 %v1003_v38 }
 0x4c0   : > { %2338 = vmatprep.subr.mxu0 %v1204_v36  ;;  %2366 = vmatpush3.msra.mxu1 %v1332_v52 }
 0x4c1   : > { %2339 = vmatpush3.msra.mxu0 %v1204_v36  ;;  %2367 = vmatprep.subr.mxu1 %v1331_v53 }
 0x4c2   : > { %2340 = vmatprep.subr.mxu0 %v1203_v40  ;;  %2368 = vmatpush3.msra.mxu1 %v1331_v53 }
 0x4c3   : > { %2341 = vmatpush3.msra.mxu0 %v1203_v40  ;;  %2369 = vmatprep.subr.mxu1 %v1330_v54 }
 0x4c4   : > { %2342 = vmatprep.subr.mxu0 %v1202_v41  ;;  %2370 = vmatpush3.msra.mxu1 %v1330_v54 }
 0x4c5   : > { %2343 = vmatpush3.msra.mxu0 %v1202_v41  ;;  %2371 = vmatprep.subr.mxu1 %v1329_v55 }
 0x4c6   : > { %2344 = vmatprep.subr.mxu0 %v1201_v42  ;;  %2372 = vmatpush3.msra.mxu1 %v1329_v55 }
 0x4c7   : > { %2345 = vmatpush3.msra.mxu0 %v1201_v42  ;;  %2373 = vmatprep.subr.mxu1 %v1328_v56  ;;  %v1911_v42 = vld [vmem:[%s3207_s7 + $0x1] ss:$0 sm:$0xff] }
 0x4c8   : > { %2346 = vmatprep.subr.mxu0 %v1200_v43  ;;  %2374 = vmatpush3.msra.mxu1 %v1328_v56 }
 0x4c9   : > { %2347 = vmatpush3.msra.mxu0 %v1200_v43  ;;  %2375 = vmatprep.subr.mxu1 %v1327_v57 }
 0x4ca   : > { %2348 = vmatprep.subr.mxu0 %v1199_v44  ;;  %2376 = vmatpush3.msra.mxu1 %v1327_v57 }
 0x4cb   : > { %2349 = vmatpush3.msra.mxu0 %v1199_v44  ;;  %2377 = vmatprep.subr.mxu1 %v1326_v58 }
 0x4cc   : > { %2350 = vmatprep.subr.mxu0 %v1198_v45  ;;  %2378 = vmatpush3.msra.mxu1 %v1326_v58 }
 0x4cd   : > { %2351 = vmatpush3.msra.mxu0 %v1198_v45  ;;  %2379 = vmatprep.subr.mxu1 %v1325_v59 }
 0x4ce   : > { %2352 = vmatprep.subr.mxu0 %v1197_v46  ;;  %2380 = vmatpush3.msra.mxu1 %v1325_v59  ;;  %v1508_v59 = vld [vmem:[#allocation12 + $0xf8] sm:$0xff] }
 0x4cf   : > { %2353 = vmatpush3.msra.mxu0 %v1197_v46  ;;  %2381 = vmatprep.subr.mxu1 %v1324_v60 }
 0x4d0   : > { %2354 = vmatprep.subr.mxu0 %v1196_v47  ;;  %2382 = vmatpush3.msra.mxu1 %v1324_v60  ;;  %v1507_v60 = vld [vmem:[#allocation12 + $0xf0] sm:$0xff] }
 0x4d1   : > { %2355 = vmatpush3.msra.mxu0 %v1196_v47  ;;  %2383 = vmatprep.subr.mxu1 %v1323_v61 }
 0x4d2   : > { %2356 = vmatprep.subr.mxu0 %v1195_v48  ;;  %2384 = vmatpush3.msra.mxu1 %v1323_v61  ;;  %v1506_v61 = vld [vmem:[#allocation12 + $0xe8] sm:$0xff] }
 0x4d3   : > { %2357 = vmatpush3.msra.mxu0 %v1195_v48  ;;  %2385 = vmatprep.subr.mxu1 %v1322_v62 }
 0x4d4   : > { %2358 = vmatprep.subr.mxu0 %v1194_v49  ;;  %2386 = vmatpush3.msra.mxu1 %v1322_v62  ;;  %v1505_v62 = vld [vmem:[#allocation12 + $0xe0] sm:$0xff] }
 0x4d5   : > { %2359 = vmatpush3.msra.mxu0 %v1194_v49  ;;  %2387 = vmatprep.subr.mxu1 %v1321_v63 }
 0x4d6   : > { %2360 = vmatprep.subr.mxu0 %v1193_v50  ;;  %2388 = vmatpush3.msra.mxu1 %v1321_v63  ;;  %v1504_v63 = vld [vmem:[#allocation12 + $0xd8] sm:$0xff] }
 0x4d7   : > { %2361 = vmatpush3.msra.mxu0 %v1193_v50  ;;  %2389 = vmatprep.subr.mxu1 %v1320_v2 }
 0x4d8   : > { %2363 = vmatmul.mubr.f32.vlgmr.msra.gmra.mxu0 %v1191_v51  ;;  %2390 = vmatpush3.msra.mxu1 %v1320_v2  ;;  %v1489_v2 = vld [vmem:[#allocation12 + $0x78] sm:$0xff] }
 0x4d9   : > { %2391 = vmatprep.subr.mxu1 %v1319_v6  ;;  %2400 = vmatprep.subr.mxu0 %v1508_v59 }
 0x4da   : > { %2392 = vmatpush3.msra.mxu1 %v1319_v6  ;;  %2401 = vmatpush3.msra.mxu0 %v1508_v59  ;;  %v1488_v6 = vld [vmem:[#allocation12 + $0x70] sm:$0xff] }
 0x4db   : > { %2393 = vmatprep.subr.mxu1 %v1318_v0  ;;  %2402 = vmatprep.subr.mxu0 %v1507_v60  ;;  %v1664_v59 = vld [vmem:[#allocation12 + $0x110] sm:$0xff] }
 0x4dc   : > { %2394 = vmatpush3.msra.mxu1 %v1318_v0  ;;  %2403 = vmatpush3.msra.mxu0 %v1507_v60  ;;  %v1502_v0 = vld [vmem:[#allocation12 + $0xc8] sm:$0xff] }
 0x4dd   : > { %2395 = vmatprep.subr.mxu1 %v1317_v8  ;;  %2404 = vmatprep.subr.mxu0 %v1506_v61  ;;  %v1663_v60 = vld [vmem:[#allocation12 + $0x108] sm:$0xff] }
 0x4de   : > { %2396 = vmatpush3.msra.mxu1 %v1317_v8  ;;  %2405 = vmatpush3.msra.mxu0 %v1506_v61  ;;  %v1487_v8 = vld [vmem:[#allocation12 + $0x68] sm:$0xff]  ;;  %v1662_v61 = vld [vmem:[#allocation12 + $0x100] sm:$0xff] }
 0x4df   : > { %2406 = vmatprep.subr.mxu0 %v1505_v62  ;;  %2435 = vmatprep.subr.mxu1 %v1489_v2 }
 0x4e0   : > { %2407 = vmatpush3.msra.mxu0 %v1505_v62 }
 0x4e1   : > { %2408 = vmatprep.subr.mxu0 %v1504_v63 }
 0x4e2   : > { %2409 = vmatpush3.msra.mxu0 %v1504_v63 }
 0x577   : > { %v2294_v9 = vpop.f32.mrf.mxu0 }
 0x579   : > { %v1106_v10 = vpop.f32.mrf.mxu0 }
 0x57f   : > { %v2329_v11 = vpop.f32.mrf.mxu1 }
 0x580   : > { %v1187_v15 = vadd.f32 %v2329_v11, %v2294_v9  ;;  %v1501_v9 = vld [vmem:[#allocation12 + $0xc0] sm:$0xff] }
 0x581   : > { %v1181_v13 = vpop.f32.mrf.mxu1  ;;  %v1486_v11 = vld [vmem:[#allocation12 + $0x60] sm:$0xff] }
 0x582   : > { %v1182_v14 = vadd.f32 %v1181_v13, %v1106_v10  ;;  %v1500_v10 = vld [vmem:[#allocation12 + $0xb8] sm:$0xff] }
 0x583   : > { %v1485_v13 = vld [vmem:[#allocation12 + $0x58] sm:$0xff] }
 0x598   : > { %v2364_v16 = vpop.f32.mrf.mxu0 }
 0x599   : > { %v1285_v1 = vadd.f32 %v2364_v16, %v1187_v15  ;;  %v1499_v15 = vld [vmem:[#allocation12 + $0xb0] sm:$0xff] }
 0x59a   : > { %v1275_v18 = vpop.f32.mrf.mxu0  ;;  %v1484_v16 = vld [vmem:[#allocation12 + $0x50] sm:$0xff] }
 0x59b   : > { %v1295_v19 = vadd.f32 %v1909_v17, %v1285_v1  ;;  %v1284_v20 = vadd.f32 %v1275_v18, %v1182_v14  ;;  %v1483_v14 = vld [vmem:[#allocation12 + $0x48] sm:$0xff]  ;;  %v1497_v1 = vld [vmem:[#allocation12 + $0xa0] sm:$0xff] }
 0x59c   : > { %v1482_v18 = vld [vmem:[#allocation12 + $0x40] sm:$0xff] }
 0x59d   : > { %v1297_v21 = vmul.f32 0.57735026, %v1295_v19  ;;  %v1294_v22 = vadd.f32 %v1909_v17, %v1284_v20  ;;  %v1498_v17 = vld [vmem:[#allocation12 + $0xa8] sm:$0xff]  ;;  %v1496_v19 = vld [vmem:[#allocation12 + $0x98] sm:$0xff] }
 0x59e   : > { %v1481_v20 = vld [vmem:[#allocation12 + $0x38] sm:$0xff] }
 0x59f   : > { %v1301_v23 = vmul.f32 0.044715, %v1297_v21  ;;  %v1296_v24 = vmul.f32 0.57735026, %v1294_v22  ;;  %v1299_v39 = vmul.f32 0.5, %v1297_v21  ;;  %v1480_v22 = vld [vmem:[#allocation12 + $0x30] sm:$0xff] }
 0x5a1   : > { %v1303_v25 = vmul.f32 %v1301_v23, %v1297_v21  ;;  %v1300_v26 = vmul.f32 0.044715, %v1296_v24  ;;  %v1298_v37 = vmul.f32 0.5, %v1296_v24  ;;  %v1494_v23 = vld [vmem:[#allocation12 + $0x88] sm:$0xff] }
 0x5a3   : > { %v1305_v27 = vmul.f32 %v1303_v25, %v1297_v21  ;;  %v1302_v28 = vmul.f32 %v1300_v26, %v1296_v24  ;;  %v1493_v25 = vld [vmem:[#allocation12 + $0x80] sm:$0xff] }
 0x5a4   : > { %v1478_v26 = vld [vmem:[#allocation12 + $0x20] sm:$0xff] }
 0x5a5   : > { %v1304_v30 = vmul.f32 %v1302_v28, %v1296_v24  ;;  %v1307_v32 = vadd.f32 %v1305_v27, %v1297_v21  ;;  %v1495_v21 = vld [vmem:[#allocation12 + $0x90] sm:$0xff]  ;;  %v1677_v27 = vld [vmem:[#allocation12 + $0x178] sm:$0xff] }
 0x5a6   : > { %v1477_v28 = vld [vmem:[#allocation12 + $0x18] sm:$0xff] }
 0x5a7   : > { %v1306_v33 = vadd.f32 %v1304_v30, %v1296_v24  ;;  %v1309_v34 = vmul.f32 0.7978846, %v1307_v32  ;;  %v1479_v24 = vld [vmem:[#allocation12 + $0x28] sm:$0xff]  ;;  %v1476_v30 = vld [vmem:[#allocation12 + $0x10] sm:$0xff] }
 0x5a8   : > { %v1475_v32 = vld [vmem:[#allocation12 + $0x8] sm:$0xff] }
 0x5a9   : > { %v1308_v5 = vmul.f32 0.7978846, %v1306_v33  ;;  %2600 = vtanh.f32 %v1309_v34  ;;  %v1474_v33 = vld [vmem:[#allocation12] sm:$0xff] }
 0x5ab   : > { %2602 = vtanh.f32 %v1308_v5 }
 0x5b6   : > { %v2601_v35 = vpop.eup %2600 }
 0x5b7   : > { %v1313_v36 = vadd.f32 1.0, %v2601_v35 }
 0x5b8   : > { %v2603_v4 = vpop.eup %2602 }
 0x5b9   : > { %v1312_v38 = vadd.f32 1.0, %v2603_v4  ;;  %v1315_v41 = vmul.f32 %v1313_v36, %v1299_v39  ;;  %v1912_v39 = vld [vmem:[%s3208_s8] ss:$0 sm:$0xff] }
 0x5bb   : > { %v1314_v40 = vmul.f32 %v1312_v38, %v1298_v37 }
 0x5bd   : > { %2397 = vmatprep.mubr.f32.mxu1 %v1314_v40 }
 0x5be   : > { %2398 = vmatmul.mubr.f32.vlgmr.msra.gmra.mxu1 %v1315_v41 }
 0x5bf   : > { %2436 = vmatpush3.msra.mxu1 %v1489_v2 }
 0x5c0   : > { %2437 = vmatprep.subr.mxu1 %v1488_v6 }
 0x5c1   : > { %2438 = vmatpush3.msra.mxu1 %v1488_v6 }
 0x5c2   : > { %2439 = vmatprep.subr.mxu1 %v1487_v8 }
 0x5c3   : > { %2440 = vmatpush3.msra.mxu1 %v1487_v8 }
 0x5c4   : > { %2441 = vmatprep.subr.mxu1 %v1486_v11 }
 0x5c5   : > { %2442 = vmatpush3.msra.mxu1 %v1486_v11 }
 0x5c6   : > { %2443 = vmatprep.subr.mxu1 %v1485_v13 }
 0x5c7   : > { %2444 = vmatpush3.msra.mxu1 %v1485_v13 }
 0x5c8   : > { %2445 = vmatprep.subr.mxu1 %v1484_v16 }
 0x5c9   : > { %2446 = vmatpush3.msra.mxu1 %v1484_v16 }
 0x5ca   : > { %2447 = vmatprep.subr.mxu1 %v1483_v14 }
 0x5cb   : > { %2448 = vmatpush3.msra.mxu1 %v1483_v14 }
 0x5cc   : > { %2449 = vmatprep.subr.mxu1 %v1482_v18 }
 0x5cd   : > { %2450 = vmatpush3.msra.mxu1 %v1482_v18 }
 0x5ce   : > { %2451 = vmatprep.subr.mxu1 %v1481_v20 }
 0x5cf   : > { %2452 = vmatpush3.msra.mxu1 %v1481_v20 }
 0x5d0   : > { %2453 = vmatprep.subr.mxu1 %v1480_v22 }
 0x5d1   : > { %2454 = vmatpush3.msra.mxu1 %v1480_v22 }
 0x5d2   : > { %2455 = vmatprep.subr.mxu1 %v1479_v24 }
 0x5d3   : > { %2456 = vmatpush3.msra.mxu1 %v1479_v24 }
 0x5d4   : > { %2457 = vmatprep.subr.mxu1 %v1478_v26 }
 0x5d5   : > { %2458 = vmatpush3.msra.mxu1 %v1478_v26 }
 0x5d6   : > { %2459 = vmatprep.subr.mxu1 %v1477_v28 }
 0x5d7   : > { %2460 = vmatpush3.msra.mxu1 %v1477_v28 }
 0x5d8   : > { %2461 = vmatprep.subr.mxu1 %v1476_v30 }
 0x5d9   : > { %2462 = vmatpush3.msra.mxu1 %v1476_v30 }
 0x5da   : > { %2463 = vmatprep.subr.mxu1 %v1475_v32 }
 0x5db   : > { %2464 = vmatpush3.msra.mxu1 %v1475_v32 }
 0x5dc   : > { %2465 = vmatprep.subr.mxu1 %v1474_v33 }
 0x5dd   : > { %2466 = vmatpush3.msra.mxu1 %v1474_v33 }
 0x67e   : > { %v2399_v43 = vpop.f32.mrf.mxu1 }
 0x67f   : > { %v1413_v44 = vadd.f32 %v2399_v43, %v1911_v42 }
 0x680   : > { %v1407_v45 = vpop.f32.mrf.mxu1 }
 0x681   : > { %v1417_v46 = vadd.f32 %v1413_v44, %v3091_v29  ;;  %v1408_v47 = vadd.f32 %v1911_v42, %v1407_v45  ;;  %v1913_v42 = vld [vmem:[%s3209_s9] ss:$0 sm:$0xff] }
 0x683   : > { %v1416_v48 = vadd.f32 %v1408_v47, %v3096_v31  ;;  %v1419_v49 = vmul.f32 %v3079_v12, %v1417_v46 }
 0x685   : > { %v1427_v50 = vmul.f32 %v3046_v3, %v1419_v49  ;;  %v1418_v51 = vmul.f32 %v3074_v7, %v1416_v48  ;;  %v1676_v48 = vld [vmem:[#allocation12 + $0x170] sm:$0xff]  ;;  %v1675_v49 = vld [vmem:[#allocation12 + $0x168] sm:$0xff] }
 0x687   : > { %1430 = vadd.xlane.f32.xlu1 %v1427_v50  ;;  %v1426_v52 = vmul.f32 %v3046_v3, %v1418_v51  ;;  %v1673_v51 = vld [vmem:[#allocation12 + $0x158] sm:$0xff] }
 0x689   : > { %1428 = vadd.xlane.f32.xlu0 %v1426_v52 }
 0x710   : > { %v1431_v53 = vpop.xlane.xlu1 %1430 }
 0x711   : > { %v1433_v54 = vmul.f32 0.125, %v1431_v53 }
 0x712   : > { %v1429_v55 = vpop.xlane.xlu0 %1428 }
 0x713   : > { %v3130_v56 = vsub.f32 %v1427_v50, %v1433_v54  ;;  %v1432_v57 = vmul.f32 0.125, %v1429_v55  ;;  %v1674_v50 = vld [vmem:[#allocation12 + $0x160] sm:$0xff]  ;;  %v1672_v55 = vld [vmem:[#allocation12 + $0x150] sm:$0xff] }
 0x715   : > { %v3132_v29 = vsub.f32 %v1426_v52, %v1432_v57  ;;  %v1437_v31 = vmul.f32 %v3046_v3, %v3130_v56  ;;  %v1670_v57 = vld [vmem:[#allocation12 + $0x140] sm:$0xff] }
 0x717   : > { %v1439_v12 = vmul.f32 %v1437_v31, %v1437_v31  ;;  %v1436_v58 = vmul.f32 %v3046_v3, %v3132_v29  ;;  %v1503_v3 = vld [vmem:[#allocation12 + $0xd0] sm:$0xff] }
 0x718   : > { %2410 = vmatprep.subr.mxu0 %v1503_v3  ;;  %v1668_v31 = vld [vmem:[#allocation12 + $0x130] sm:$0xff] }
 0x719   : > { %1442 = vadd.xlane.f32.xlu1 %v1439_v12  ;;  %v1438_v7 = vmul.f32 %v1436_v58, %v1436_v58  ;;  %2411 = vmatpush3.msra.mxu0 %v1503_v3  ;;  %v1667_v12 = vld [vmem:[#allocation12 + $0x128] sm:$0xff]  ;;  %v1666_v58 = vld [vmem:[#allocation12 + $0x120] sm:$0xff] }
 0x71a   : > { %2412 = vmatprep.subr.mxu0 %v1502_v0 }
 0x71b   : > { %1440 = vadd.xlane.f32.xlu0 %v1438_v7  ;;  %2413 = vmatpush3.msra.mxu0 %v1502_v0  ;;  %v1665_v7 = vld [vmem:[#allocation12 + $0x118] sm:$0xff] }
 0x71c   : > { %2414 = vmatprep.subr.mxu0 %v1501_v9 }
 0x71d   : > { %2415 = vmatpush3.msra.mxu0 %v1501_v9  ;;  %v1914_v9 = vld [vmem:[%s3211_s11] ss:$0 sm:$0xff] }
 0x71e   : > { %2416 = vmatprep.subr.mxu0 %v1500_v10 }
 0x71f   : > { %2417 = vmatpush3.msra.mxu0 %v1500_v10 }
 0x720   : > { %2418 = vmatprep.subr.mxu0 %v1499_v15 }
 0x721   : > { %2419 = vmatpush3.msra.mxu0 %v1499_v15 }
 0x722   : > { %2420 = vmatprep.subr.mxu0 %v1498_v17 }
 0x723   : > { %2421 = vmatpush3.msra.mxu0 %v1498_v17 }
 0x724   : > { %2422 = vmatprep.subr.mxu0 %v1497_v1 }
 0x725   : > { %2423 = vmatpush3.msra.mxu0 %v1497_v1 }
 0x726   : > { %2424 = vmatprep.subr.mxu0 %v1496_v19 }
 0x727   : > { %2425 = vmatpush3.msra.mxu0 %v1496_v19 }
 0x728   : > { %2426 = vmatprep.subr.mxu0 %v1495_v21 }
 0x729   : > { %2427 = vmatpush3.msra.mxu0 %v1495_v21 }
 0x72a   : > { %2428 = vmatprep.subr.mxu0 %v1494_v23 }
 0x72b   : > { %2429 = vmatpush3.msra.mxu0 %v1494_v23 }
 0x72c   : > { %2430 = vmatprep.subr.mxu0 %v1493_v25 }
 0x72d   : > { %2431 = vmatpush3.msra.mxu0 %v1493_v25 }
 0x72e   : > { %2470 = vmatprep.subr.mxu0 %v1677_v27 }
 0x7a2   : > { %v1443_v34 = vpop.xlane.xlu1 %1442 }
 0x7a3   : > { %v1445_v5 = vmul.f32 0.125, %v1443_v34 }
 0x7a4   : > { %v1441_v35 = vpop.xlane.xlu0 %1440 }
 0x7a5   : > { %v1447_v4 = vadd.f32 1e-05, %v1445_v5  ;;  %v1444_v36 = vmul.f32 0.125, %v1441_v35 }
 0x7a7   : > { %2604 = vrsqrt.f32 %v1447_v4  ;;  %v1446_v37 = vadd.f32 1e-05, %v1444_v36 }
 0x7a9   : > { %2606 = vrsqrt.f32 %v1446_v37 }
 0x7b4   : > { %v2605_v38 = vpop.eup %2604 }
 0x7b5   : > { %v1451_v40 = vmul.f32 %v2605_v38, %v3130_v56  ;;  %v1671_v56 = vld [vmem:[#allocation12 + $0x148] sm:$0xff] }
 0x7b6   : > { %v2607_v41 = vpop.eup %2606 }
 0x7b7   : > { %v1459_v43 = vmul.f32 %v1912_v39, %v1451_v40  ;;  %v1450_v44 = vmul.f32 %v2607_v41, %v3132_v29  ;;  %v1669_v29 = vld [vmem:[#allocation12 + $0x138] sm:$0xff] }
 0x7b9   : > { %v1467_v45 = vadd.f32 %v1913_v42, %v1459_v43  ;;  %v1458_v46 = vmul.f32 %v1912_v39, %v1450_v44 }
 0x7bb   : > { %1471 = vst [vmem:[#allocation3 + $0x10] sm:$0xff] %v1467_v45  ;;  %v1466_v47 = vadd.f32 %v1913_v42, %v1458_v46 }
 0x7bd   : > { %1470 = vst [vmem:[#allocation3 + $0x8] sm:$0xff] %v1466_v47  ;;  %2432 = vmatprep.mubr.f32.mxu0 %v1466_v47 }
 0x7be   : > { %2433 = vmatmul.mubr.f32.vlgmr.msra.gmra.mxu0 %v1467_v45 }
 0x7bf   : > { %2471 = vmatpush3.msra.mxu0 %v1677_v27 }
 0x7c0   : > { %2472 = vmatprep.subr.mxu0 %v1676_v48 }
 0x7c1   : > { %2473 = vmatpush3.msra.mxu0 %v1676_v48 }
 0x7c2   : > { %2474 = vmatprep.subr.mxu0 %v1675_v49  ;;  %v1660_v62 = vld [vmem:[#allocation3 + $0x11] sm:$0xff] }
 0x7c3   : > { %2475 = vmatpush3.msra.mxu0 %v1675_v49 }
 0x7c4   : > { %v1472_v52 = vld [vmem:[#allocation3 + $0x7] sm:$0xff]  ;;  %v1473_v53 = vld [vmem:[#allocation3 + $0xf] sm:$0xff]  ;;  %2476 = vmatprep.subr.mxu0 %v1674_v50 }
 0x7c5   : > { %v1659_v54 = vld [vmem:[#allocation3 + $0x9] sm:$0xff]  ;;  %2467 = vmatprep.mubr.f32.mxu1 %v1472_v52  ;;  %2477 = vmatpush3.msra.mxu0 %v1674_v50 }
 0x7c6   : > { %2502 = vmatprep.mubr.f32.mxu0 %v1659_v54  ;;  %2468 = vmatmul.mubr.f32.vlgmr.msra.gmra.mxu1 %v1473_v53 }
 0x7c7   : > { %2478 = vmatprep.subr.mxu0 %v1673_v51 }
 0x7c8   : > { %2479 = vmatpush3.msra.mxu0 %v1673_v51 }
 0x7c9   : > { %2480 = vmatprep.subr.mxu0 %v1672_v55 }
 0x7ca   : > { %2481 = vmatpush3.msra.mxu0 %v1672_v55 }
 0x7cb   : > { %2482 = vmatprep.subr.mxu0 %v1671_v56 }
 0x7cc   : > { %2483 = vmatpush3.msra.mxu0 %v1671_v56 }
 0x7cd   : > { %2484 = vmatprep.subr.mxu0 %v1670_v57 }
 0x7ce   : > { %2485 = vmatpush3.msra.mxu0 %v1670_v57 }
 0x7cf   : > { %2486 = vmatprep.subr.mxu0 %v1669_v29 }
 0x7d0   : > { %2487 = vmatpush3.msra.mxu0 %v1669_v29 }
 0x7d1   : > { %2488 = vmatprep.subr.mxu0 %v1668_v31 }
 0x7d2   : > { %2489 = vmatpush3.msra.mxu0 %v1668_v31 }
 0x7d3   : > { %2490 = vmatprep.subr.mxu0 %v1667_v12 }
 0x7d4   : > { %2491 = vmatpush3.msra.mxu0 %v1667_v12 }
 0x7d5   : > { %2492 = vmatprep.subr.mxu0 %v1666_v58 }
 0x7d6   : > { %2493 = vmatpush3.msra.mxu0 %v1666_v58 }
 0x7d7   : > { %2494 = vmatprep.subr.mxu0 %v1665_v7 }
 0x7d8   : > { %2495 = vmatpush3.msra.mxu0 %v1665_v7 }
 0x7d9   : > { %2496 = vmatprep.subr.mxu0 %v1664_v59 }
 0x7da   : > { %2497 = vmatpush3.msra.mxu0 %v1664_v59 }
 0x7db   : > { %2498 = vmatprep.subr.mxu0 %v1663_v60 }
 0x7dc   : > { %2499 = vmatpush3.msra.mxu0 %v1663_v60 }
 0x7dd   : > { %2500 = vmatprep.subr.mxu0 %v1662_v61 }
 0x7de   : > { %2501 = vmatpush3.msra.mxu0 %v1662_v61 }
 0x7df   : > { %2503 = vmatmul.mubr.f32.vlgmr.msra.gmra.mxu0 %v1660_v62 }
 0x87e   : > { %v2434_v63 = vpop.f32.mrf.mxu0 }
 0x880   : > { %v1575_v3 = vpop.f32.mrf.mxu0 }
 0x886   : > { %v2469_v2 = vpop.f32.mrf.mxu1 }
 0x887   : > { %v1656_v0 = vadd.f32 %v2469_v2, %v2434_v63 }
 0x888   : > { %v1650_v6 = vpop.f32.mrf.mxu1 }
 0x889   : > { %v1651_v11 = vadd.f32 %v1650_v6, %v1575_v3 }
 0x89f   : > { %v2504_v8 = vpop.f32.mrf.mxu0 }
 0x8a0   : > { %v1754_v10 = vadd.f32 %v2504_v8, %v1656_v0 }
 0x8a1   : > { %v1744_v13 = vpop.f32.mrf.mxu0 }
 0x8a2   : > { %v1763_v15 = vadd.f32 %v1914_v9, %v1754_v10  ;;  %v1753_v16 = vadd.f32 %v1744_v13, %v1651_v11 }
 0x8a4   : > { %1765 = vst [vmem:[%s453_s28 + $0x8] sm:$0xff] %v1763_v15  ;;  %v1762_v17 = vadd.f32 %v1914_v9, %v1753_v16 }
 0x8a6   : > { %1764 = vst [vmem:[%s453_s28] sm:$0xff] %v1762_v17 }
 0x8a7   : > { %2735 = shalt.err (!%p2732_p10)
}
 0x8a8   : > { %s2736_s16 = scalar_lea.hbm %s3157_s13, 256  ;;  %s2740_s10 = scalar_lea.hbm %s3212_s12, 512 }
 0x8a9   : > { %p2737_p6 = scmp.ne.s32.totalorder %s3157_s13, %s2736_s16  ;;  %p2741_p3 = scmp.lt.s32.totalorder %s3157_s13, %s3212_s12 }
 0x8aa   : > { %p2742_p11 = scmp.lt.s32.totalorder %s2740_s10, %s2736_s16 }
 0x8ab   : > { %p2738_p4 = pnand %p2737_p6, %p3242_p1 }
 0x8ac   : > { %p2743_p5 = por %p2742_p11, %p2741_p3 }
 0x8ad   : > { %p2739_p8 = pneg %p2738_p4 }
 0x8af   : > { %p2744_p7 = pnand %p2743_p5, %p2739_p8 }
 0x8b1   : > { %2747 = shalt.err (!%p2744_p7)
}
 0x8b2   : > { %s2807_s6 = smov 128   ;;  %s2808_s29 = smov 8  }
 0x8b3   : > { %2519 = dma.vmem_to_hbm [thread:$0]  (%p3242_p1), %s3152_s20, 256, %s3157_s13, %s1767_s26, %s2807_s6, %s2807_s6, %s2808_s29  }
 0x8b4 PF: > { %s1795_s23 = sand.u32 1, %s2784_s24   ;;  %p3243_p12 = scmp.ne.s32.totalorder %s3225_s30, 0 }
 0x8b5   : > { %p3244_p9 = scmp.ge.s32.totalorder %s2796_s27, 2  ;;  %s1796_s0 = scalar_lea.sflag [#allocation8], %s1795_s23 }
 0x8b7   : > { %p2536_p13 = pnand %p3244_p9, %p3243_p12 }
 0x8b9   : > { %p2537_p0 = pneg %p2536_p13 }
 0x8bb   : > { %2779 = dma.done.wait (%p2537_p0), %s1796_s0, 256  }
 0x8bc   : > { %2781 = vsyncadd (%p2537_p0), %s1796_s0, 4294967040  ;;  %s3245_s17 = sld [smem:[#allocation20_spill]]  ;;  %p31_p2 = scmp.ge.s32.totalorder %s2966_s18, 4  }
 0x8bd   : > { %s3246_s26 = sld [smem:[#allocation21_spill]]  ;;  %s3247_s24 = smov %s2788_s25 }
 0x8be   : > { %s3249_s27 = smov %s2966_s18  ;;  %33 = sbr.rel (!%p31_p2) target bundleno = 15 (0xf), region = 133 }
 0x8c2   : > { %s3248_s25 = smov %s3245_s17 }
 0x8c3   :  { %1801 = vsyncpa [#allocation7], 1 }
 0x8c4   :  { %1803 = vsyncpa [#allocation7 + $0x1], 1 }
 0x8c5   :  { %1804 = vsyncpa [#allocation10], 1 }
 0x8c6   :  { %1805 = vsyncpa [#allocation13], 1 }
 0x8c7   :  { %1806 = vsyncpa [#allocation8], 1 }
 0x8c8   :  { %1808 = vsyncpa [#allocation8 + $0x1], 1 }

</bundles_post_ra>
